<compile_context>
chip_gen: v7x
topology: tpu7x:2x2x1
jax: 0.10.0
libtpu: 0.0.40
codegen_flags: <defaults>
</compile_context>

<pallas_src>
import functools
import math

import jax
import jax.numpy as jnp
from jax import lax
from jax.experimental import pallas as pl
from jax.experimental.pallas import tpu as pltpu


def _cdiv(a, b):
    return -(-a // b)


def _epi_grad_loss_kernel(x_ref, y_ref, out_ref, wts_ref, acc_ref, *,
                          w, ax, s, wt_dx, wt_dy, wt_dax, wt_day):
    """EPI-gradient L1 loss partial for one row-block.

    x_ref / y_ref : (R, L) block, R = TN*Ay*Ax rows, L = H*W lanes.
    out_ref       : (1, 8, 128) per-partial output (scalar broadcast, lane dense).
    wts_ref       : (4, R, L) f32 scratch -- cached mask*weight planes.
    acc_ref       : (R, L)   f32 scratch -- tile-shaped partial accumulator.
    """
    R, L = x_ref.shape
    n = pl.program_id(1)

    @pl.when(n == 0)
    def _init():
        acc_ref[...] = jnp.zeros_like(acc_ref)

        # Build the four mask*weight planes ONCE (per core / per partial) from
        # iotas rolled with the *same* pltpu.roll used on the data, so validity
        # is independent of the hardware rotation direction.
        lane = lax.broadcasted_iota(jnp.int32, (R, L), 1)
        row = lax.broadcasted_iota(jnp.int32, (R, L), 0)

        def partner(idx, shift, axis, ring):
            rolled = pltpu.roll(idx, shift % ring, axis=axis)
            delta = rolled - idx
            return rolled, (delta == shift) | (delta == -shift)

        def same_group(a, b, g):
            if (g & (g - 1)) == 0:            # power of two: cheap bit mask (VPU)
                msk = ~(g - 1)
                return (a & msk) == (b & msk)
            return (a // g) == (b // g)       # general path (non-pow2 dims only)

        lane_w, adj_w = partner(lane, 1, 1, L)   # spatial-x neighbour
        _, adj_h = partner(lane, w, 1, L)        # spatial-y neighbour
        row_ax, adj_ax = partner(row, 1, 0, R)   # angular-x neighbour
        row_ay, adj_ay = partner(row, ax, 0, R)  # angular-y neighbour

        valid_w = adj_w & same_group(lane, lane_w, w)    # stay within one spatial row h
        valid_h = adj_h
        valid_ax = adj_ax & same_group(row, row_ax, ax)  # same (slice, ay) group
        valid_ay = adj_ay & same_group(row, row_ay, s)   # same slice

        zero = jnp.float32(0.0)
        wts_ref[0] = jnp.where(valid_w, jnp.float32(wt_dx), zero)
        wts_ref[1] = jnp.where(valid_h, jnp.float32(wt_dy), zero)
        wts_ref[2] = jnp.where(valid_ax, jnp.float32(wt_dax), zero)
        wts_ref[3] = jnp.where(valid_ay, jnp.float32(wt_day), zero)

    # Diff the single tensor d = x - y (exact:  (x[1:]-x[:-1]) - (y[1:]-y[:-1])
    # == d[1:]-d[:-1]).  Inputs stay in their HBM dtype until here.
    d = (x_ref[...] - y_ref[...]).astype(jnp.float32)

    # Full-shape shifted diffs (XLU rolls) + cached mask*weights: per-step work
    # is pure lockstep VPU adds/muls into the resident accumulator tile.
    acc = acc_ref[...]
    acc = acc + jnp.abs(pltpu.roll(d, 1 % L, axis=1) - d) * wts_ref[0]
    acc = acc + jnp.abs(pltpu.roll(d, w % L, axis=1) - d) * wts_ref[1]
    acc = acc + jnp.abs(pltpu.roll(d, 1 % R, axis=0) - d) * wts_ref[2]
    acc = acc + jnp.abs(pltpu.roll(d, ax % R, axis=0) - d) * wts_ref[3]
    acc_ref[...] = acc

    # Single deferred cross-lane/sublane reduction, only on the last step.
    @pl.when(n == pl.num_programs(1) - 1)
    def _finish():
        out_ref[...] = (jnp.zeros(out_ref.shape, out_ref.dtype)
                        + jnp.sum(acc_ref[...]))


def cal_epi_grad_loss(infer, gt, *, block_target_bytes=2 << 20):
    """Pallas TPU implementation of cal_epi_grad_loss.forward(infer, gt)."""
    assert infer.shape == gt.shape and infer.ndim == 6
    B, C, Ay, Ax, H, W = infer.shape
    N = B * C
    S = Ay * Ax          # rows per light-field slice (sublane axis)
    L = H * W            # flattened spatial extent   (lane axis)

    itemsize = jnp.dtype(infer.dtype).itemsize
    sublane = {4: 8, 2: 16, 1: 32}.get(itemsize, 8)
    m = sublane // math.gcd(S, sublane)      # TN granularity keeping rows tile-aligned

    # Multiple slices per block (~2 MiB per input) to amortize per-step overhead
    # (per-step overhead ~0.35 us; bigger tiles -> closer to HBM roofline).
    # TODO(synk): for very large slices (e.g. 9x9x512x512 f32 ~ 85 MiB) add a
    # spatial grid axis with a 1-row halo so blocks fit v7x's 64 MiB VMEM.
    tn = max(1, block_target_bytes // (S * L * itemsize))
    tn = max(m, (tn // m) * m)
    tn = min(tn, m * _cdiv(N, m))

    n_blocks_real = _cdiv(N, tn)
    num_partials = 2 if n_blocks_real >= 2 else 1   # per-core partials (v7x megacore)
    steps = _cdiv(n_blocks_real, num_partials)
    n_blocks = num_partials * steps
    N_pad = n_blocks * tn                 # zero-padded slices contribute exactly 0
    R_blk = tn * S

    # Per-gradient element counts over the *true* batch (torch L1Loss 'mean').
    cnt_dx = N * Ay * Ax * H * (W - 1)
    cnt_dy = N * Ay * Ax * (H - 1) * W
    cnt_dax = N * Ay * (Ax - 1) * H * W
    cnt_day = N * (Ay - 1) * Ax * H * W

    def weight(count, ring, shift):
        if count == 0:                     # degenerate axis of extent 1
            return 0.0
        # When the roll ring is exactly 2*shift every adjacent pair is seen at
        # both endpoints, so halve the weight (keeps the result exact).
        scale = 0.5 if ring == 2 * shift else 1.0
        return scale / count

    wt_dx = weight(cnt_dx, L, 1)
    wt_dy = weight(cnt_dy, L, W)
    wt_dax = weight(cnt_dax, R_blk, 1)
    wt_day = weight(cnt_day, R_blk, Ax)

    # Lane/sublane-dense layout (free reshape), keep HBM dtype end-to-end.
    x = infer.reshape(N, S, L)
    y = gt.reshape(N, S, L)
    if N_pad > N:
        pad = ((0, N_pad - N), (0, 0), (0, 0))
        x = jnp.pad(x, pad)
        y = jnp.pad(y, pad)
    x = x.reshape(N_pad * S, L)
    y = y.reshape(N_pad * S, L)

    kernel = functools.partial(
        _epi_grad_loss_kernel, w=W, ax=Ax, s=S,
        wt_dx=wt_dx, wt_dy=wt_dy, wt_dax=wt_dax, wt_day=wt_day)

    in_spec = pl.BlockSpec((R_blk, L), lambda p, n: (p * steps + n, 0))

    in_block_bytes = R_blk * L * itemsize
    scratch_bytes = 5 * R_blk * L * 4     # 4 weight planes + accumulator (f32)
    vmem_limit = int(max(4 * in_block_bytes + scratch_bytes + (4 << 20), 16 << 20))

    out = pl.pallas_call(
        kernel,
        out_shape=jax.ShapeDtypeStruct((num_partials, 8, 128), jnp.float32),
        grid=(num_partials, steps),
        in_specs=[in_spec, in_spec],
        out_specs=pl.BlockSpec((1, 8, 128), lambda p, n: (p, 0, 0)),
        scratch_shapes=[
            pltpu.VMEM((4, R_blk, L), jnp.float32),   # cached mask*weight planes
            pltpu.VMEM((R_blk, L), jnp.float32),      # tile-shaped partial accumulator
        ],
        compiler_params=pltpu.CompilerParams(
            dimension_semantics=("parallel", "arbitrary"),
            vmem_limit_bytes=vmem_limit,
        ),
    )(x, y)

    # Each partial broadcast its scalar over an (8, 128) block; take one copy each.
    return jnp.sum(out[:, 0, 0])


def _reference_loss(infer, gt):
    """Pure-JAX reference mirroring the PyTorch module."""
    def grad6(a):
        d_dy = a[:, :, :, :, 1:, :] - a[:, :, :, :, :-1, :]
        d_dx = a[:, :, :, :, :, 1:] - a[:, :, :, :, :, :-1]
        d_day = a[:, :, 1:, :, :, :] - a[:, :, :-1, :, :, :]
        d_dax = a[:, :, :, 1:, :, :] - a[:, :, :, :-1, :, :]
        return d_dx, d_dy, d_dax, d_day

    ig = grad6(infer)
    gg = grad6(gt)
    return sum(jnp.mean(jnp.abs(a - b)) for a, b in zip(ig, gg))


if __name__ == "__main__":
    key = jax.random.PRNGKey(0)
    k1, k2 = jax.random.split(key)

    # Small light-field: batch=2, channels=3, angular 4x4, spatial 16x16.
    shape = (2, 3, 4, 4, 16, 16)
    infer = jax.random.uniform(k1, shape, dtype=jnp.float32)
    gt = jax.random.uniform(k2, shape, dtype=jnp.float32)

    ref = jax.block_until_ready(_reference_loss(infer, gt))

    # Default path: whole batch fits one lane-dense block -> grid (1, 1).
    loss = jax.block_until_ready(cal_epi_grad_loss(infer, gt))
    assert jnp.allclose(loss, ref, rtol=3e-5, atol=1e-6), (loss, ref)

    # Force the multi-block path: 2 parallel partials x 2 accumulation steps,
    # with zero-padding of the slice axis (exercises megacore split + resident
    # accumulator + deferred reduction).
    loss2 = jax.block_until_ready(
        cal_epi_grad_loss(infer, gt, block_target_bytes=32 * 1024))
    assert jnp.allclose(loss2, ref, rtol=3e-5, atol=1e-6), (loss2, ref)

    print("KERNEL_OK")
</pallas_src>

<mosaic_0001>
module attributes {stable_mosaic.version = 11 : i64} {
  func.func @_epi_grad_loss_kernel(%arg0: i32, %arg1: i32, %arg2: memref<96x256xf32, #tpu.memory_space<vmem>>, %arg3: memref<96x256xf32, #tpu.memory_space<vmem>>, %arg4: memref<1x8x128xf32, #tpu.memory_space<vmem>>, %arg5: memref<4x96x256xf32, #tpu.memory_space<vmem>>, %arg6: memref<96x256xf32, #tpu.memory_space<vmem>>) attributes {dimension_semantics = [#tpu.dimension_semantics<parallel>, #tpu.dimension_semantics<arbitrary>], iteration_bounds = array<i64: 1, 1>, scalar_prefetch = 0 : i64, scratch_operands = 2 : i64, tpu.core_type = #tpu.core_type<tc>, window_params = [{transform_indices = @transform_0, window_bounds = array<i64: 96, 256>}, {transform_indices = @transform_1, window_bounds = array<i64: 96, 256>}, {transform_indices = @transform_2, window_bounds = array<i64: 1, 8, 128>}]} {
    %c0_i32 = arith.constant 0 : i32
    %0 = arith.cmpi eq, %arg1, %c0_i32 : i32
    %1 = arith.extui %0 : i1 to i32
    %c0_i32_0 = arith.constant 0 : i32
    %2 = arith.cmpi ne, %1, %c0_i32_0 : i32
    scf.if %2 {
      %cst = arith.constant 0.000000e+00 : f32
      %39 = vector.broadcast %cst : f32 to vector<96x256xf32>
      %c0_20 = arith.constant 0 : index
      %c0_21 = arith.constant 0 : index
      %40 = vector.load %arg6[%c0_20, %c0_21] : memref<96x256xf32, #tpu.memory_space<vmem>>, vector<96x256xf32>
      tpu.vector_store %arg6[%c0_20, %c0_21], %39 {strides = array<i32>} : memref<96x256xf32, #tpu.memory_space<vmem>>, vector<96x256xf32>,
      %41 = tpu.iota {dimensions = array<i32: 1>} : vector<96x256xi32>
      %42 = tpu.iota {dimensions = array<i32: 0>} : vector<96x256xi32>
      %c1_i32_22 = arith.constant 1 : i32
      %43 = tpu.dynamic_rotate %41 by %c1_i32_22 dim 1 : vector<96x256xi32>, i32 -> vector<96x256xi32>
      %44 = arith.subi %43, %41 : vector<96x256xi32>
      %c1_i32_23 = arith.constant 1 : i32
      %45 = vector.broadcast %c1_i32_23 : i32 to vector<96x256xi32>
      %46 = arith.cmpi eq, %44, %45 : vector<96x256xi32>
      %c-1_i32 = arith.constant -1 : i32
      %47 = vector.broadcast %c-1_i32 : i32 to vector<96x256xi32>
      %48 = arith.cmpi eq, %44, %47 : vector<96x256xi32>
      %49 = arith.ori %46, %48 : vector<96x256xi1>
      %c16_i32_24 = arith.constant 16 : i32
      %50 = tpu.dynamic_rotate %41 by %c16_i32_24 dim 1 : vector<96x256xi32>, i32 -> vector<96x256xi32>
      %51 = arith.subi %50, %41 : vector<96x256xi32>
      %c16_i32_25 = arith.constant 16 : i32
      %52 = vector.broadcast %c16_i32_25 : i32 to vector<96x256xi32>
      %53 = arith.cmpi eq, %51, %52 : vector<96x256xi32>
      %c-16_i32 = arith.constant -16 : i32
      %54 = vector.broadcast %c-16_i32 : i32 to vector<96x256xi32>
      %55 = arith.cmpi eq, %51, %54 : vector<96x256xi32>
      %56 = arith.ori %53, %55 : vector<96x256xi1>
      %c1_i32_26 = arith.constant 1 : i32
      %57 = tpu.dynamic_rotate %42 by %c1_i32_26 dim 0 : vector<96x256xi32>, i32 -> vector<96x256xi32>
      %58 = arith.subi %57, %42 : vector<96x256xi32>
      %c1_i32_27 = arith.constant 1 : i32
      %59 = vector.broadcast %c1_i32_27 : i32 to vector<96x256xi32>
      %60 = arith.cmpi eq, %58, %59 : vector<96x256xi32>
      %c-1_i32_28 = arith.constant -1 : i32
      %61 = vector.broadcast %c-1_i32_28 : i32 to vector<96x256xi32>
      %62 = arith.cmpi eq, %58, %61 : vector<96x256xi32>
      %63 = arith.ori %60, %62 : vector<96x256xi1>
      %c4_i32_29 = arith.constant 4 : i32
      %64 = tpu.dynamic_rotate %42 by %c4_i32_29 dim 0 : vector<96x256xi32>, i32 -> vector<96x256xi32>
      %65 = arith.subi %64, %42 : vector<96x256xi32>
      %c4_i32_30 = arith.constant 4 : i32
      %66 = vector.broadcast %c4_i32_30 : i32 to vector<96x256xi32>
      %67 = arith.cmpi eq, %65, %66 : vector<96x256xi32>
      %c-4_i32 = arith.constant -4 : i32
      %68 = vector.broadcast %c-4_i32 : i32 to vector<96x256xi32>
      %69 = arith.cmpi eq, %65, %68 : vector<96x256xi32>
      %70 = arith.ori %67, %69 : vector<96x256xi1>
      %c-16_i32_31 = arith.constant -16 : i32
      %71 = vector.broadcast %c-16_i32_31 : i32 to vector<96x256xi32>
      %72 = arith.andi %41, %71 : vector<96x256xi32>
      %c-16_i32_32 = arith.constant -16 : i32
      %73 = vector.broadcast %c-16_i32_32 : i32 to vector<96x256xi32>
      %74 = arith.andi %43, %73 : vector<96x256xi32>
      %75 = arith.cmpi eq, %72, %74 : vector<96x256xi32>
      %76 = arith.andi %49, %75 : vector<96x256xi1>
      %c-4_i32_33 = arith.constant -4 : i32
      %77 = vector.broadcast %c-4_i32_33 : i32 to vector<96x256xi32>
      %78 = arith.andi %42, %77 : vector<96x256xi32>
      %c-4_i32_34 = arith.constant -4 : i32
      %79 = vector.broadcast %c-4_i32_34 : i32 to vector<96x256xi32>
      %80 = arith.andi %57, %79 : vector<96x256xi32>
      %81 = arith.cmpi eq, %78, %80 : vector<96x256xi32>
      %82 = arith.andi %63, %81 : vector<96x256xi1>
      %c-16_i32_35 = arith.constant -16 : i32
      %83 = vector.broadcast %c-16_i32_35 : i32 to vector<96x256xi32>
      %84 = arith.andi %42, %83 : vector<96x256xi32>
      %c-16_i32_36 = arith.constant -16 : i32
      %85 = vector.broadcast %c-16_i32_36 : i32 to vector<96x256xi32>
      %86 = arith.andi %64, %85 : vector<96x256xi32>
      %87 = arith.cmpi eq, %84, %86 : vector<96x256xi32>
      %88 = arith.andi %70, %87 : vector<96x256xi1>
      %cst_37 = arith.constant 4.34027788E-5 : f32
      %cst_38 = arith.constant 0.000000e+00 : f32
      %89 = vector.broadcast %cst_37 : f32 to vector<96x256xf32>
      %90 = vector.broadcast %cst_38 : f32 to vector<96x256xf32>
      %91 = arith.select %76, %89, %90 : vector<96x256xi1>, vector<96x256xf32>
      %c0_39 = arith.constant 0 : index
      %c0_40 = arith.constant 0 : index
      %c0_41 = arith.constant 0 : index
      %92 = vector.load %arg5[%c0_39, %c0_40, %c0_41] : memref<4x96x256xf32, #tpu.memory_space<vmem>>, vector<1x96x256xf32>
      %93 = vector.shape_cast %92 : vector<1x96x256xf32> to vector<96x256xf32>
      %94 = vector.shape_cast %91 : vector<96x256xf32> to vector<1x96x256xf32>
      tpu.vector_store %arg5[%c0_39, %c0_40, %c0_41], %94 {strides = array<i32>} : memref<4x96x256xf32, #tpu.memory_space<vmem>>, vector<1x96x256xf32>,
      %cst_42 = arith.constant 4.34027788E-5 : f32
      %cst_43 = arith.constant 0.000000e+00 : f32
      %95 = vector.broadcast %cst_42 : f32 to vector<96x256xf32>
      %96 = vector.broadcast %cst_43 : f32 to vector<96x256xf32>
      %97 = arith.select %56, %95, %96 : vector<96x256xi1>, vector<96x256xf32>
      %c1_44 = arith.constant 1 : index
      %c0_45 = arith.constant 0 : index
      %c0_46 = arith.constant 0 : index
      %98 = vector.load %arg5[%c1_44, %c0_45, %c0_46] : memref<4x96x256xf32, #tpu.memory_space<vmem>>, vector<1x96x256xf32>
      %99 = vector.shape_cast %98 : vector<1x96x256xf32> to vector<96x256xf32>
      %100 = vector.shape_cast %97 : vector<96x256xf32> to vector<1x96x256xf32>
      tpu.vector_store %arg5[%c1_44, %c0_45, %c0_46], %100 {strides = array<i32>} : memref<4x96x256xf32, #tpu.memory_space<vmem>>, vector<1x96x256xf32>,
      %cst_47 = arith.constant 5.42534726E-5 : f32
      %cst_48 = arith.constant 0.000000e+00 : f32
      %101 = vector.broadcast %cst_47 : f32 to vector<96x256xf32>
      %102 = vector.broadcast %cst_48 : f32 to vector<96x256xf32>
      %103 = arith.select %82, %101, %102 : vector<96x256xi1>, vector<96x256xf32>
      %c2_49 = arith.constant 2 : index
      %c0_50 = arith.constant 0 : index
      %c0_51 = arith.constant 0 : index
      %104 = vector.load %arg5[%c2_49, %c0_50, %c0_51] : memref<4x96x256xf32, #tpu.memory_space<vmem>>, vector<1x96x256xf32>
      %105 = vector.shape_cast %104 : vector<1x96x256xf32> to vector<96x256xf32>
      %106 = vector.shape_cast %103 : vector<96x256xf32> to vector<1x96x256xf32>
      tpu.vector_store %arg5[%c2_49, %c0_50, %c0_51], %106 {strides = array<i32>} : memref<4x96x256xf32, #tpu.memory_space<vmem>>, vector<1x96x256xf32>,
      %cst_52 = arith.constant 5.42534726E-5 : f32
      %cst_53 = arith.constant 0.000000e+00 : f32
      %107 = vector.broadcast %cst_52 : f32 to vector<96x256xf32>
      %108 = vector.broadcast %cst_53 : f32 to vector<96x256xf32>
      %109 = arith.select %88, %107, %108 : vector<96x256xi1>, vector<96x256xf32>
      %c3_54 = arith.constant 3 : index
      %c0_55 = arith.constant 0 : index
      %c0_56 = arith.constant 0 : index
      %110 = vector.load %arg5[%c3_54, %c0_55, %c0_56] : memref<4x96x256xf32, #tpu.memory_space<vmem>>, vector<1x96x256xf32>
      %111 = vector.shape_cast %110 : vector<1x96x256xf32> to vector<96x256xf32>
      %112 = vector.shape_cast %109 : vector<96x256xf32> to vector<1x96x256xf32>
      tpu.vector_store %arg5[%c3_54, %c0_55, %c0_56], %112 {strides = array<i32>} : memref<4x96x256xf32, #tpu.memory_space<vmem>>, vector<1x96x256xf32>,
    } else {
    }
    %c0 = arith.constant 0 : index
    %c0_1 = arith.constant 0 : index
    %3 = vector.load %arg2[%c0, %c0_1] : memref<96x256xf32, #tpu.memory_space<vmem>>, vector<96x256xf32>
    %c0_2 = arith.constant 0 : index
    %c0_3 = arith.constant 0 : index
    %4 = vector.load %arg3[%c0_2, %c0_3] : memref<96x256xf32, #tpu.memory_space<vmem>>, vector<96x256xf32>
    %5 = arith.subf %3, %4 : vector<96x256xf32>
    %c0_4 = arith.constant 0 : index
    %c0_5 = arith.constant 0 : index
    %6 = vector.load %arg6[%c0_4, %c0_5] : memref<96x256xf32, #tpu.memory_space<vmem>>, vector<96x256xf32>
    %c1_i32 = arith.constant 1 : i32
    %7 = tpu.dynamic_rotate %5 by %c1_i32 dim 1 : vector<96x256xf32>, i32 -> vector<96x256xf32>
    %8 = arith.subf %7, %5 : vector<96x256xf32>
    %9 = math.absf %8 : vector<96x256xf32>
    %c0_6 = arith.constant 0 : index
    %c0_7 = arith.constant 0 : index
    %c0_8 = arith.constant 0 : index
    %10 = vector.load %arg5[%c0_6, %c0_7, %c0_8] : memref<4x96x256xf32, #tpu.memory_space<vmem>>, vector<1x96x256xf32>
    %11 = vector.shape_cast %10 : vector<1x96x256xf32> to vector<96x256xf32>
    %12 = arith.mulf %9, %11 : vector<96x256xf32>
    %13 = arith.addf %6, %12 : vector<96x256xf32>
    %c16_i32 = arith.constant 16 : i32
    %14 = tpu.dynamic_rotate %5 by %c16_i32 dim 1 : vector<96x256xf32>, i32 -> vector<96x256xf32>
    %15 = arith.subf %14, %5 : vector<96x256xf32>
    %16 = math.absf %15 : vector<96x256xf32>
    %c1 = arith.constant 1 : index
    %c0_9 = arith.constant 0 : index
    %c0_10 = arith.constant 0 : index
    %17 = vector.load %arg5[%c1, %c0_9, %c0_10] : memref<4x96x256xf32, #tpu.memory_space<vmem>>, vector<1x96x256xf32>
    %18 = vector.shape_cast %17 : vector<1x96x256xf32> to vector<96x256xf32>
    %19 = arith.mulf %16, %18 : vector<96x256xf32>
    %20 = arith.addf %13, %19 : vector<96x256xf32>
    %c1_i32_11 = arith.constant 1 : i32
    %21 = tpu.dynamic_rotate %5 by %c1_i32_11 dim 0 : vector<96x256xf32>, i32 -> vector<96x256xf32>
    %22 = arith.subf %21, %5 : vector<96x256xf32>
    %23 = math.absf %22 : vector<96x256xf32>
    %c2 = arith.constant 2 : index
    %c0_12 = arith.constant 0 : index
    %c0_13 = arith.constant 0 : index
    %24 = vector.load %arg5[%c2, %c0_12, %c0_13] : memref<4x96x256xf32, #tpu.memory_space<vmem>>, vector<1x96x256xf32>
    %25 = vector.shape_cast %24 : vector<1x96x256xf32> to vector<96x256xf32>
    %26 = arith.mulf %23, %25 : vector<96x256xf32>
    %27 = arith.addf %20, %26 : vector<96x256xf32>
    %c4_i32 = arith.constant 4 : i32
    %28 = tpu.dynamic_rotate %5 by %c4_i32 dim 0 : vector<96x256xf32>, i32 -> vector<96x256xf32>
    %29 = arith.subf %28, %5 : vector<96x256xf32>
    %30 = math.absf %29 : vector<96x256xf32>
    %c3 = arith.constant 3 : index
    %c0_14 = arith.constant 0 : index
    %c0_15 = arith.constant 0 : index
    %31 = vector.load %arg5[%c3, %c0_14, %c0_15] : memref<4x96x256xf32, #tpu.memory_space<vmem>>, vector<1x96x256xf32>
    %32 = vector.shape_cast %31 : vector<1x96x256xf32> to vector<96x256xf32>
    %33 = arith.mulf %30, %32 : vector<96x256xf32>
    %34 = arith.addf %27, %33 : vector<96x256xf32>
    %c0_16 = arith.constant 0 : index
    %c0_17 = arith.constant 0 : index
    %35 = vector.load %arg6[%c0_16, %c0_17] : memref<96x256xf32, #tpu.memory_space<vmem>>, vector<96x256xf32>
    tpu.vector_store %arg6[%c0_16, %c0_17], %34 {strides = array<i32>} : memref<96x256xf32, #tpu.memory_space<vmem>>, vector<96x256xf32>,
    %c0_i32_18 = arith.constant 0 : i32
    %36 = arith.cmpi eq, %arg1, %c0_i32_18 : i32
    %37 = arith.extui %36 : i1 to i32
    %c0_i32_19 = arith.constant 0 : i32
    %38 = arith.cmpi ne, %37, %c0_i32_19 : i32
    scf.if %38 {
      %cst = arith.constant 0.000000e+00 : f32
      %39 = vector.broadcast %cst : f32 to vector<1x8x128xf32>
      %c0_20 = arith.constant 0 : index
      %c0_21 = arith.constant 0 : index
      %40 = vector.load %arg6[%c0_20, %c0_21] : memref<96x256xf32, #tpu.memory_space<vmem>>, vector<96x256xf32>
      %41 = vector.shape_cast %40 : vector<96x256xf32> to vector<1x96x256xf32>
      %cst_22 = arith.constant dense<0.000000e+00> : vector<1xf32>
      %42 = vector.multi_reduction <add>, %41, %cst_22 [1, 2] : vector<1x96x256xf32> to vector<1xf32>
      %43 = vector.shape_cast %42 : vector<1xf32> to vector<1x1x1xf32>
      %44 = vector.extract %43[0, 0, 0] : f32 from vector<1x1x1xf32>
      %45 = vector.broadcast %44 : f32 to vector<1x8x128xf32>
      %46 = arith.addf %39, %45 : vector<1x8x128xf32>
      %c0_23 = arith.constant 0 : index
      %c0_24 = arith.constant 0 : index
      %c0_25 = arith.constant 0 : index
      %47 = vector.load %arg4[%c0_23, %c0_24, %c0_25] : memref<1x8x128xf32, #tpu.memory_space<vmem>>, vector<1x8x128xf32>
      tpu.vector_store %arg4[%c0_23, %c0_24, %c0_25], %46 {strides = array<i32>} : memref<1x8x128xf32, #tpu.memory_space<vmem>>, vector<1x8x128xf32>,
    } else {
    }
    return
  }
  func.func @transform_0(%arg0: i32, %arg1: i32) -> (i32, i32) {
    %c1_i32 = arith.constant 1 : i32
    %0 = arith.muli %arg0, %c1_i32 : i32
    %1 = arith.addi %0, %arg1 : i32
    %c0_i32 = arith.constant 0 : i32
    %c0_i32_0 = arith.constant 0 : i32
    return %1, %c0_i32 : i32, i32
  }
  func.func @transform_1(%arg0: i32, %arg1: i32) -> (i32, i32) {
    %c1_i32 = arith.constant 1 : i32
    %0 = arith.muli %arg0, %c1_i32 : i32
    %1 = arith.addi %0, %arg1 : i32
    %c0_i32 = arith.constant 0 : i32
    %c0_i32_0 = arith.constant 0 : i32
    return %1, %c0_i32 : i32, i32
  }
  func.func @transform_2(%arg0: i32, %arg1: i32) -> (i32, i32, i32) {
    %c0_i32 = arith.constant 0 : i32
    %c0_i32_0 = arith.constant 0 : i32
    %c0_i32_1 = arith.constant 0 : i32
    return %arg0, %c0_i32, %c0_i32_0 : i32, i32, i32
  }
}

</mosaic_0001>

<bundles_post_ra>
// kernel: tpu_custom_call.1
= control target key start
LH: loop header
LB: loop body
LE: loop exit
PB: predicated region body
PF: predicated region fallthrough
CT: control target
= control target key end

     0   :  { %7 = vsyncpa [#allocation5], 0  ;;  %s3218_s0 = inlined_call_operand.hbm [shape: f32[96,256], index: 0, kind: input, shape index: {}]   ;;  %s3219_s1 = inlined_call_operand.hbm [shape: f32[96,256], index: 1, kind: input, shape index: {}]   ;;  %s3220_s2 = inlined_call_operand.hbm [shape: f32[1,8,128], index: 2, kind: output, shape index: {}]  }
   0x1   :  { %8 = vsyncpa [#allocation8], 0 }
   0x2   :  { %9 = vsyncpa [#allocation6], 0  ;;  %s1515_s9 = smov [#allocation4]   ;;  %s1443_s13 = scalar_lea.hbm %s3218_s0, 3072 }
   0x3   :  { %s20_s10 = sshll.u32 %s1515_s9, 4  ;;  %p1444_p0 = scmp.ne.s32.totalorder %s3218_s0, %s1443_s13  ;;  %s21_s10 = int_to_ptr.vmem [resolvable:$true] %s20_s10 }
   0x4   :  { %p1447_p1 = scmp.lt.u32.totalorder %s1443_s13, %s3218_s0 }
   0x6   :  { %p1449_p2 = pnand %p1447_p1, %p1444_p0 }
   0x8   :  { %1452 = shalt.err (!%p1449_p2)
}
   0x9   :  { %s1453_s18 = scalar_lea.vmem %s21_s10, 3072  ;;  %p1458_p4 = scmp.lt.s32.totalorder %s21_s10, %s21_s10 }
   0xa   :  { %p1454_p3 = scmp.ne.s32.totalorder %s21_s10, %s1453_s18  ;;  %p1459_p5 = scmp.lt.s32.totalorder %s1453_s18, %s1453_s18 }
   0xc   :  { %p1460_p6 = por %p1459_p5, %p1458_p4 }
   0xe   :  { %p1461_p7 = pnand %p1460_p6, %p1454_p3 }
  0x10   :  { %1464 = shalt.err (!%p1461_p7)
}
  0x11   :  { %s1516_s19 = smov 256   ;;  %s1517_s20 = smov 16  }
  0x12   :  { %26 = dma.hbm_to_vmem [thread:$0]  %s3218_s0, 3072, %s21_s10, [#allocation5], %s1516_s19, %s1516_s19, %s1517_s20  }
  0x13   :  { %s1518_s23 = smov [#allocation7]   ;;  %s1465_s27 = scalar_lea.hbm %s3219_s1, 3072 }
  0x14   :  { %s37_s24 = sshll.u32 %s1518_s23, 4  ;;  %p1466_p8 = scmp.ne.s32.totalorder %s3219_s1, %s1465_s27  ;;  %s38_s24 = int_to_ptr.vmem [resolvable:$true] %s37_s24 }
  0x15   :  { %p1469_p9 = scmp.lt.u32.totalorder %s1465_s27, %s3219_s1 }
  0x17   :  { %p1471_p10 = pnand %p1469_p9, %p1466_p8 }
  0x19   :  { %1474 = shalt.err (!%p1471_p10)
}
  0x1a   :  { %s1475_s4 = scalar_lea.vmem %s38_s24, 3072  ;;  %p1480_p12 = scmp.lt.s32.totalorder %s38_s24, %s38_s24 }
  0x1b   :  { %p1476_p11 = scmp.ne.s32.totalorder %s38_s24, %s1475_s4  ;;  %p1481_p13 = scmp.lt.s32.totalorder %s1475_s4, %s1475_s4 }
  0x1d   :  { %p1482_p0 = por %p1481_p13, %p1480_p12 }
  0x1f   :  { %p1483_p1 = pnand %p1482_p0, %p1476_p11 }
  0x21   :  { %1486 = shalt.err (!%p1483_p1)
}
  0x22   :  { %43 = dma.hbm_to_vmem [thread:$0]  %s3219_s1, 3072, %s38_s24, [#allocation8], %s1516_s19, %s1516_s19, %s1517_s20  }
  0x23   :  { %1509 = dma.done.wait [#allocation5], 3072  }
  0x24   :  { %1510 = vsyncadd [#allocation5], 4294964224 }
  0x25   :  { %1511 = dma.done.wait [#allocation8], 3072  }
  0x26   :  { %1512 = vsyncadd [#allocation8], 4294964224  ;;  %v82_v0 = vlaneseq  ;;  %s1519_s6 = smov 1   ;;  %v506_v3 = vld [vmem:[#allocation4 + $0x8] sm:$0xff]  ;;  %v505_v5 = vld [vmem:[#allocation4] sm:$0xff]  ;;  %s1521_s1 = smov [#allocation9]  }
  0x27   :  { %v530_v4 = vld [vmem:[#allocation7 + $0x8] sm:$0xff]  ;;  %v529_v7 = vld [vmem:[#allocation7] sm:$0xff]  ;;  %v508_v9 = vld [vmem:[#allocation4 + $0x18] sm:$0xff]  ;;  %s1424_s7 = sshll.u32 %s1521_s1, 4  ;;  %s1425_s7 = int_to_ptr.vmem [resolvable:$true] %s1424_s7 }
  0x28   :  { %v1563_v1 = vand.u32 127, %v82_v0  ;;  %v1576_v6 = vsub.f32 %v506_v3, %v530_v4  ;;  %v1578_v8 = vsub.f32 %v505_v5, %v529_v7  ;;  %v532_v10 = vld [vmem:[#allocation7 + $0x18] sm:$0xff]  ;;  %v507_v11 = vld [vmem:[#allocation4 + $0x10] sm:$0xff]  ;;  %v1592_v15 = vshrl.u32 %v82_v0, 7  ;;  %v510_v16 = vld [vmem:[#allocation4 + $0x28] sm:$0xff]  ;;  %s1487_s9 = scalar_lea.vmem %s1425_s7, 128  ;;  %p1492_p3 = scmp.lt.s32.totalorder %s1425_s7, %s1425_s7 }
  0x29   :  { %v531_v12 = vld [vmem:[#allocation7 + $0x10] sm:$0xff]  ;;  %v1588_v13 = vsub.f32 %v508_v9, %v532_v10  ;;  %v534_v17 = vld [vmem:[#allocation7 + $0x28] sm:$0xff]  ;;  %v509_v18 = vld [vmem:[#allocation4 + $0x20] sm:$0xff]  ;;  %p1488_p2 = scmp.ne.s32.totalorder %s1425_s7, %s1487_s9  ;;  %p1493_p4 = scmp.lt.s32.totalorder %s1487_s9, %s1487_s9 }
  0x2a   :  { %113 = vrot.lane.b32.xlu1 %v1563_v1, %s1517_s20  ;;  %98 = vrot.lane.b32.xlu0 %v1563_v1, %s1519_s6  ;;  %v1570_v2 = vadd.s32 128, %v1563_v1  ;;  %v1590_v14 = vsub.f32 %v507_v11, %v531_v12  ;;  %v533_v19 = vld [vmem:[#allocation7 + $0x20] sm:$0xff]  ;;  %v1599_v20 = vadd.s32 88, %v1592_v15  ;;  %v1605_v21 = vsub.f32 %v510_v16, %v534_v17  ;;  %v512_v27 = vld [vmem:[#allocation4 + $0x38] sm:$0xff]  ;;  %v511_v29 = vld [vmem:[#allocation4 + $0x30] sm:$0xff] }
  0x2b   :  { %v1607_v22 = vsub.f32 %v509_v18, %v533_v19  ;;  %v128_v23 = vrot.slane %v1592_v15, 7  ;;  %v201_v25 = vrot.slane %v1592_v15, 4  ;;  %vm3256_vm0 = vcmp.lt.s32.totalorder %v1592_v15, 1  ;;  %v536_v28 = vld [vmem:[#allocation7 + $0x38] sm:$0xff]  ;;  %v535_v30 = vld [vmem:[#allocation7 + $0x30] sm:$0xff]  ;;  %v514_v38 = vld [vmem:[#allocation4 + $0x48] sm:$0xff]  ;;  %p1494_p5 = por %p1493_p4, %p1492_p3 }
  0x2c   :  { %v3225_v24 = vrot.slane %v1599_v20, 7  ;;  %v3224_v26 = vrot.slane %v1599_v20, 4  ;;  %vm3258_vm1 = vcmp.lt.s32.totalorder %v1592_v15, 4  ;;  %v1628_v33 = vadd.s32 8, %v1592_v15  ;;  %v538_v39 = vld [vmem:[#allocation7 + $0x48] sm:$0xff]  ;;  %v513_v43 = vld [vmem:[#allocation4 + $0x40] sm:$0xff] }
  0x2d   :  { %v1634_v34 = vsub.f32 %v512_v27, %v536_v28  ;;  %v1636_v35 = vsub.f32 %v511_v29, %v535_v30  ;;  %v282_v40 = vand.u32 4294967292, %v1592_v15  ;;  %v537_v44 = vld [vmem:[#allocation7 + $0x40] sm:$0xff]  ;;  %v516_v45 = vld [vmem:[#allocation4 + $0x58] sm:$0xff]  ;;  %v330_v52 = vand.u32 4294967280, %v1592_v15  ;;  %v515_v56 = vld [vmem:[#allocation4 + $0x50] sm:$0xff]  ;;  %p1495_p6 = pnand %p1494_p5, %p1488_p2 }
  0x2e   :  { %115 = vrot.lane.b32.xlu1 %v1570_v2, %s1517_s20  ;;  %100 = vrot.lane.b32.xlu0 %v1570_v2, %s1519_s6  ;;  %v152_v31 = vsel %vm3256_vm0, %v3225_v24, %v128_v23  ;;  %v225_v32 = vsel %vm3258_vm1, %v3224_v26, %v201_v25  ;;  %v129_v42 = vrot.slane %v1628_v33, 7  ;;  %v202_v48 = vrot.slane %v1628_v33, 4  ;;  %v540_v49 = vld [vmem:[#allocation7 + $0x58] sm:$0xff]  ;;  %v539_v57 = vld [vmem:[#allocation7 + $0x50] sm:$0xff]  ;;  %v518_v58 = vld [vmem:[#allocation4 + $0x68] sm:$0xff] }
  0x2f   :  { %v1639_v36 = vsub.s32 %v152_v31, %v1592_v15  ;;  %v1642_v37 = vsub.s32 %v225_v32, %v1592_v15  ;;  %v294_v41 = vand.u32 4294967292, %v152_v31  ;;  %v528_v50 = vld [vmem:[#allocation4 + $0xb8] sm:$0xff]  ;;  %v342_v53 = vand.u32 4294967280, %v225_v32  ;;  %v542_v60 = vld [vmem:[#allocation7 + $0x68] sm:$0xff]  ;;  %v527_v61 = vld [vmem:[#allocation4 + $0xb0] sm:$0xff] }
  0x30   :  { %v552_v51 = vld [vmem:[#allocation7 + $0xb8] sm:$0xff]  ;;  %v991_v54 = vrot.slane %v1576_v6, 7  ;;  %v1655_v55 = vsub.f32 %v514_v38, %v538_v39  ;;  %v1660_v59 = vsub.f32 %v513_v43, %v537_v44  ;;  %v551_v62 = vld [vmem:[#allocation7 + $0xb0] sm:$0xff]  ;;  %v1671_v0 = vsel %vm3256_vm0, %v128_v23, %v129_v42  ;;  %v517_v3 = vld [vmem:[#allocation4 + $0x60] sm:$0xff] }
  0x31   :  { %vm165_vm2 = vcmp.eq.s32.totalorder %v1639_v36, 1  ;;  %vm177_vm3 = vcmp.eq.s32.totalorder %v1639_v36, 4294967295  ;;  %vm238_vm4 = vcmp.eq.s32.totalorder %v1642_v37, 4  ;;  %vm250_vm5 = vcmp.eq.s32.totalorder %v1642_v37, 4294967292  ;;  %v541_v4 = vld [vmem:[#allocation7 + $0x60] sm:$0xff]  ;;  %v520_v5 = vld [vmem:[#allocation4 + $0x78] sm:$0xff] }
  0x32   :  { %625 = vrot.lane.b32.xlu1 %v1576_v6, %s1519_s6  ;;  %601 = vrot.lane.b32.xlu0 %v1578_v8, %s1519_s6  ;;  %3259 = vst [vmem:[#allocation13_spill] sm:$0xff] %v1655_v55  ;;  %3260 = vst [vmem:[#allocation14_spill] sm:$0xff] %v1660_v59  ;;  %vm1663_vm6 = vcmp.eq.s32.totalorder %v282_v40, %v294_v41  ;;  %v1673_v7 = vsub.f32 %v528_v50, %v552_v51  ;;  %v1163_v9 = vrot.slane %v1576_v6, 4  ;;  %v544_v17 = vld [vmem:[#allocation7 + $0x78] sm:$0xff]  ;;  %v519_v18 = vld [vmem:[#allocation4 + $0x70] sm:$0xff] }
  0x33   :  { %v990_v10 = vrot.slane %v1578_v8, 7  ;;  %v1681_v11 = vsel %vm3258_vm1, %v201_v25, %v202_v48  ;;  %v1687_v12 = vsub.f32 %v516_v45, %v540_v49  ;;  %v1689_v16 = vsub.f32 %v515_v56, %v539_v57  ;;  %v543_v19 = vld [vmem:[#allocation7 + $0x70] sm:$0xff]  ;;  %v522_v29 = vld [vmem:[#allocation4 + $0x88] sm:$0xff]  ;;  %vm1732_vm8 = vmor %vm165_vm2, %vm177_vm3 }
  0x34   :  { %3263 = vst [vmem:[#allocation15_spill] sm:$0xff] %v1673_v7  ;;  %vm1691_vm7 = vcmp.eq.s32.totalorder %v330_v52, %v342_v53  ;;  %v1162_v25 = vrot.slane %v1578_v8, 4  ;;  %v993_v27 = vrot.slane %v1588_v13, 7  ;;  %v1697_v28 = vsub.f32 %v518_v58, %v542_v60  ;;  %v546_v30 = vld [vmem:[#allocation7 + $0x88] sm:$0xff]  ;;  %v521_v52 = vld [vmem:[#allocation4 + $0x80] sm:$0xff]  ;;  %v524_v60 = vld [vmem:[#allocation4 + $0x98] sm:$0xff] }
  0x35   :  { %v1699_v31 = vsub.f32 %v527_v61, %v551_v62  ;;  %v3222_v32 = vrot.slane %v1673_v7, 7  ;;  %v154_v38 = vsub.s32 %v1671_v0, %v1628_v33  ;;  %v1704_v39 = vsub.f32 %v517_v3, %v541_v4  ;;  %v545_v53 = vld [vmem:[#allocation7 + $0x80] sm:$0xff]  ;;  %v548_v61 = vld [vmem:[#allocation7 + $0x98] sm:$0xff]  ;;  %vm1752_vm13 = vmor %vm238_vm4, %vm250_vm5 }
  0x36   :  { %820 = vrot.lane.b32.xlu1 %v1576_v6, %s1517_s20  ;;  %796 = vrot.lane.b32.xlu0 %v1578_v8, %s1517_s20  ;;  %3266 = vst [vmem:[#allocation16_spill] sm:$0xff] %v1697_v28  ;;  %v3221_v40 = vrot.slane %v1673_v7, 4  ;;  %v227_v41 = vsub.s32 %v1681_v11, %v1628_v33  ;;  %v992_v43 = vrot.slane %v1590_v14, 7  ;;  %v1710_v44 = vsub.f32 %v520_v5, %v544_v17  ;;  %v523_v5 = vld [vmem:[#allocation4 + $0x90] sm:$0xff]  ;;  %vm318_vm14 = vmand %vm1732_vm8, %vm1663_vm6 }
  0x37   :  { %3267 = vst [vmem:[#allocation17_spill] sm:$0xff] %v1699_v31  ;;  %v1712_v45 = vsub.f32 %v519_v18, %v543_v19  ;;  %v3223_v49 = vrot.slane %v1699_v31, 7  ;;  %v283_v50 = vand.u32 4294967292, %v1628_v33  ;;  %v1720_v51 = vsub.f32 %v522_v29, %v546_v30  ;;  %v547_v17 = vld [vmem:[#allocation7 + $0x90] sm:$0xff]  ;;  %vm366_vm5 = vmand %vm1752_vm13, %vm1691_vm7 }
  0x38   :  { %3268 = vst [vmem:[#allocation18_spill] sm:$0xff] %v1710_v44  ;;  %v295_v56 = vand.u32 4294967292, %v1671_v0  ;;  %v331_v57 = vand.u32 4294967280, %v1628_v33  ;;  %v1038_v58 = vsel %vm3256_vm0, %v991_v54, %v993_v27  ;;  %v1040_v0 = vsel %vm3256_vm0, %v3222_v32, %v991_v54  ;;  %v550_v32 = vld [vmem:[#allocation7 + $0xa8] sm:$0xff] }
  0x39   :  { %3269 = vst [vmem:[#allocation19_spill] sm:$0xff] %v1712_v45  ;;  %vm166_vm9 = vcmp.eq.s32.totalorder %v154_v38, 1  ;;  %v343_v3 = vand.u32 4294967280, %v1681_v11  ;;  %v1165_v4 = vrot.slane %v1588_v13, 4  ;;  %v1210_v36 = vsel %vm3258_vm1, %v3221_v40, %v1163_v9  ;;  %v526_v40 = vld [vmem:[#allocation4 + $0xa8] sm:$0xff] }
  0x3a   :  { %627 = vrot.lane.b32.xlu1 %v1588_v13, %s1519_s6  ;;  %603 = vrot.lane.b32.xlu0 %v1590_v14, %s1519_s6  ;;  %vm178_vm10 = vcmp.eq.s32.totalorder %v154_v38, 4294967295  ;;  %vm239_vm11 = vcmp.eq.s32.totalorder %v227_v41, 4  ;;  %vm251_vm12 = vcmp.eq.s32.totalorder %v227_v41, 4294967292  ;;  %v3226_v11 = vrot.slane %v1699_v31, 4  ;;  %v525_v38 = vld [vmem:[#allocation4 + $0xa0] sm:$0xff] }
  0x3b   :  { %v1039_v18 = vsel %vm3256_vm0, %v3223_v49, %v990_v10  ;;  %v1037_v19 = vsel %vm3256_vm0, %v990_v10, %v992_v43  ;;  %v1766_v29 = vadd.s32 16, %v1592_v15  ;;  %v1772_v37 = vsub.f32 %v521_v52, %v545_v53  ;;  %vm1785_vm15 = vmor %vm166_vm9, %vm178_vm10 }
  0x3c   :  { %v1774_v30 = vsub.f32 %v524_v60, %v548_v61  ;;  %v1042_v10 = vsub.f32 %v1040_v0, %v1576_v6  ;;  %v1164_v49 = vrot.slane %v1590_v14, 4  ;;  %v1212_v26 = vsub.f32 %v1210_v36, %v1576_v6  ;;  %v549_v36 = vld [vmem:[#allocation7 + $0xa0] sm:$0xff]  ;;  %vm1805_vm3 = vmor %vm239_vm11, %vm251_vm12 }
  0x3d   :  { %vm1789_vm2 = vcmp.eq.s32.totalorder %v283_v50, %v295_v56  ;;  %v1044_v60 = vsub.f32 %v1038_v58, %v1588_v13  ;;  %v1208_v61 = vsel %vm3258_vm1, %v1163_v9, %v1165_v4  ;;  %v1800_v0 = vsub.f32 %v523_v5, %v547_v17 }
  0x3e   :  { %822 = vrot.lane.b32.xlu1 %v1588_v13, %s1517_s20  ;;  %798 = vrot.lane.b32.xlu0 %v1590_v14, %s1517_s20  ;;  %v1041_v24 = vsub.f32 %v1039_v18, %v1578_v8  ;;  %vm1809_vm4 = vcmp.eq.s32.totalorder %v331_v57, %v343_v3  ;;  %v1043_v58 = vsub.f32 %v1037_v19, %v1590_v14  ;;  %v130_v41 = vrot.slane %v1766_v29, 7  ;;  %vm319_vm9 = vmand %vm1785_vm15, %vm1789_vm2 }
  0x3f   :  { %v1814_v47 = vsub.f32 %v526_v40, %v550_v32  ;;  %v1209_v9 = vsel %vm3258_vm1, %v3226_v11, %v1162_v25  ;;  %v1828_v57 = vadd.s32 24, %v1592_v15  ;;  %v1066_v32 = vand.u32 2147483647, %v1042_v10  ;;  %vm367_vm10 = vmand %vm1805_vm3, %vm1809_vm4 }
  0x40   :  { %v1214_v40 = vsub.f32 %v1208_v61, %v1588_v13  ;;  %v1845_v3 = vsel %vm3258_vm1, %v1162_v25, %v1164_v49  ;;  %v203_v5 = vrot.slane %v1766_v29, 4  ;;  %v1848_v17 = vsub.f32 %v525_v38, %v549_v36 }
  0x41   :  { %v3227_v18 = vmov 0.0   ;;  %v1236_v10 = vand.u32 2147483647, %v1212_v26  ;;  %v1068_v25 = vand.u32 2147483647, %v1044_v60  ;;  %v1211_v63 = vsub.f32 %v1209_v9, %v1578_v8 }
  0x42   :  { %629 = vrot.lane.b32.xlu1 %v1605_v21, %s1519_s6  ;;  %605 = vrot.lane.b32.xlu0 %v1607_v22, %s1519_s6  ;;  %v431_v19 = vsel %vm318_vm14, 5.4253473e-05, %v3227_v18  ;;  %v1866_v52 = vsel %vm366_vm5, 5.4253473e-05, %v3227_v18  ;;  %v1065_v62 = vand.u32 2147483647, %v1041_v24  ;;  %v150_v54 = vsel %vm3256_vm0, %v129_v42, %v130_v41 }
  0x43   :  { %v1869_v53 = vand.u32 2147483647, %v1043_v58  ;;  %v1872_v26 = vsel %vm319_vm9, 5.4253473e-05, %v3227_v18  ;;  %v3229_v23 = vrot.slane %v1828_v57, 7  ;;  %v1885_v24 = vmul.f32 %v1066_v32, %v431_v19 }
  0x44   :  { %v1888_v60 = vsel %vm367_vm10, 5.4253473e-05, %v3227_v18  ;;  %v1238_v38 = vand.u32 2147483647, %v1214_v40  ;;  %v223_v36 = vsel %vm3258_vm1, %v202_v48, %v203_v5  ;;  %v1895_v42 = vmul.f32 %v1236_v10, %v1866_v52 }
  0x45   :  { %v994_v50 = vrot.slane %v1607_v22, 7  ;;  %v995_v56 = vrot.slane %v1605_v21, 7  ;;  %v3230_v58 = vrot.slane %v1828_v57, 4  ;;  %v1900_v9 = vmul.f32 %v1065_v62, %v431_v19 }
  0x46   :  { %824 = vrot.lane.b32.xlu1 %v1605_v21, %s1517_s20  ;;  %800 = vrot.lane.b32.xlu0 %v1607_v22, %s1517_s20  ;;  %v1902_v32 = vand.u32 2147483647, %v1211_v63  ;;  %v155_v40 = vsub.s32 %v150_v54, %v1766_v29  ;;  %v3232_v33 = vrot.slane %v1607_v22, 4  ;;  %v1907_v11 = vmul.f32 %v1068_v25, %v1872_v26 }
  0x47   :  { %v228_v48 = vsub.s32 %v223_v36, %v1766_v29  ;;  %v3231_v10 = vrot.slane %v1605_v21, 4  ;;  %v149_v46 = vsel %vm3256_vm0, %v130_v41, %v3229_v23  ;;  %v284_v19 = vand.u32 4294967292, %v1766_v29 }
  0x48   :  { %3282 = vst [vmem:[#allocation20_spill] sm:$0xff] %v1907_v11  ;;  %v296_v62 = vand.u32 4294967292, %v150_v54  ;;  %v332_v25 = vand.u32 4294967280, %v1766_v29  ;;  %v344_v63 = vand.u32 4294967280, %v223_v36  ;;  %v1922_v18 = vmul.f32 %v1238_v38, %v1888_v60 }
  0x49   :  { %v1035_v41 = vsel %vm3256_vm0, %v992_v43, %v994_v50  ;;  %v1036_v23 = vsel %vm3256_vm0, %v993_v27, %v995_v56  ;;  %v222_v54 = vsel %vm3258_vm1, %v203_v5, %v3230_v58  ;;  %vm167_vm6 = vcmp.eq.s32.totalorder %v155_v40, 1 }
  0x4a   :  { %631 = vrot.lane.b32.xlu1 %v1634_v34, %s1519_s6  ;;  %607 = vrot.lane.b32.xlu0 %v1636_v35, %s1519_s6  ;;  %3283 = vst [vmem:[#allocation21_spill] sm:$0xff] %v1922_v18  ;;  %vm179_vm7 = vcmp.eq.s32.totalorder %v155_v40, 4294967295  ;;  %v1205_v29 = vsel %vm3258_vm1, %v1164_v49, %v3232_v33  ;;  %v156_v43 = vsub.s32 %v149_v46, %v1828_v57  ;;  %vm240_vm8 = vcmp.eq.s32.totalorder %v228_v48, 4 }
  0x4b   :  { %vm252_vm11 = vcmp.eq.s32.totalorder %v228_v48, 4294967292  ;;  %v1206_v27 = vsel %vm3258_vm1, %v1165_v4, %v3231_v10  ;;  %v3233_v5 = vrot.slane %v1636_v35, 7  ;;  %vm1954_vm12 = vcmp.eq.s32.totalorder %v284_v19, %v296_v62  ;;  %vm1964_vm14 = vmor %vm167_vm6, %vm179_vm7 }
  0x4c   :  { %vm1958_vm13 = vcmp.eq.s32.totalorder %v332_v25, %v344_v63  ;;  %v229_v36 = vsub.s32 %v222_v54, %v1828_v57  ;;  %v3234_v4 = vrot.slane %v1634_v34, 7  ;;  %v1045_v58 = vsub.f32 %v1035_v41, %v1607_v22  ;;  %vm1977_vm3 = vmor %vm240_vm8, %vm252_vm11 }
  0x4d   :  { %v1046_v10 = vsub.f32 %v1036_v23, %v1605_v21  ;;  %v285_v19 = vand.u32 4294967292, %v1828_v57  ;;  %v297_v62 = vand.u32 4294967292, %v149_v46  ;;  %v1215_v25 = vsub.f32 %v1205_v29, %v1607_v22  ;;  %vm320_vm4 = vmand %vm1964_vm14, %vm1954_vm12 }
  0x4e   :  { %826 = vrot.lane.b32.xlu1 %v1634_v34, %s1517_s20  ;;  %802 = vrot.lane.b32.xlu0 %v1636_v35, %s1517_s20  ;;  %vm168_vm15 = vcmp.eq.s32.totalorder %v156_v43, 1  ;;  %vm180_vm2 = vcmp.eq.s32.totalorder %v156_v43, 4294967295  ;;  %v1973_v63 = vadd.s32 32, %v1592_v15  ;;  %v333_v41 = vand.u32 4294967280, %v1828_v57  ;;  %vm368_vm7 = vmand %vm1977_vm3, %vm1958_vm13 }
  0x4f   :  { %v345_v61 = vand.u32 4294967280, %v222_v54  ;;  %v1033_v46 = vsel %vm3256_vm0, %v994_v50, %v3233_v5  ;;  %v3235_v23 = vrot.slane %v1636_v35, 4  ;;  %vm241_vm5 = vcmp.eq.s32.totalorder %v229_v36, 4  ;;  %vm2010_vm10 = vmor %vm168_vm15, %vm180_vm2 }
  0x50   :  { %vm253_vm9 = vcmp.eq.s32.totalorder %v229_v36, 4294967292  ;;  %v1034_v50 = vsel %vm3256_vm0, %v995_v56, %v3234_v4  ;;  %v3236_v48 = vrot.slane %v1634_v34, 4  ;;  %v2002_v54 = vmul.f32 %v1869_v53, %v1872_v26 }
  0x51   :  { %v3292_v29 = vsub.f32 %v1845_v3, %v1590_v14  ;;  %v1216_v40 = vsub.f32 %v1206_v27, %v1605_v21  ;;  %vm2014_vm6 = vcmp.eq.s32.totalorder %v285_v19, %v297_v62  ;;  %v1069_v53 = vand.u32 2147483647, %v1045_v58  ;;  %vm2029_vm8 = vmor %vm241_vm5, %vm253_vm9 }
  0x52   :  { %633 = vrot.lane.b32.xlu1 %v1655_v55, %s1519_s6  ;;  %609 = vrot.lane.b32.xlu0 %v1660_v59, %s1519_s6  ;;  %v1047_v3 = vsub.f32 %v1033_v46, %v1636_v35  ;;  %v132_v26 = vrot.slane %v1973_v63, 7  ;;  %v2025_v43 = vadd.s32 40, %v1592_v15  ;;  %v3297_v27 = vmov 0.0   ;;  %vm321_vm12 = vmand %vm2010_vm10, %vm2014_vm6 }
  0x53   :  { %v1237_v49 = vand.u32 2147483647, %v3292_v29  ;;  %v433_v29 = vsel %vm320_vm4, 5.4253473e-05, %v3297_v27  ;;  %vm2033_vm11 = vcmp.eq.s32.totalorder %v333_v41, %v345_v61  ;;  %v1048_v58 = vsub.f32 %v1034_v50, %v1634_v34 }
  0x54   :  { %v3302_v46 = vrot.slane %v1607_v22, 4  ;;  %v1070_v36 = vand.u32 2147483647, %v1046_v10  ;;  %v1239_v61 = vand.u32 2147483647, %v1215_v25  ;;  %v3303_v41 = vrot.slane %v1605_v21, 4  ;;  %vm369_vm14 = vmand %vm2029_vm8, %vm2033_vm11 }
  0x55   :  { %v2064_v10 = vmul.f32 %v1237_v49, %v1888_v60  ;;  %v470_v5 = vsel %vm368_vm7, 5.4253473e-05, %v3297_v27  ;;  %v1240_v25 = vand.u32 2147483647, %v1216_v40  ;;  %v1071_v56 = vand.u32 2147483647, %v1047_v3 }
  0x56   :  { %828 = vrot.lane.b32.xlu1 %v1655_v55, %s1517_s20  ;;  %804 = vrot.lane.b32.xlu0 %v1660_v59, %s1517_s20  ;;  %v1203_v4 = vsel %vm3258_vm1, %v3302_v46, %v3235_v23  ;;  %v1204_v50 = vsel %vm3258_vm1, %v3303_v41, %v3236_v48  ;;  %v205_v46 = vrot.slane %v1973_v63, 4  ;;  %v2061_v23 = vmul.f32 %v1902_v32, %v1866_v52 }
  0x57   :  { %v1217_v52 = vsub.f32 %v1203_v4, %v1636_v35  ;;  %v3304_v32 = vrot.slane %v1828_v57, 7  ;;  %v3237_v33 = vrot.slane %v2025_v43, 7  ;;  %v2082_v49 = vmul.f32 %v1069_v53, %v433_v29 }
  0x58   :  { %v434_v38 = vsel %vm321_vm12, 5.4253473e-05, %v3297_v27  ;;  %v1072_v40 = vand.u32 2147483647, %v1048_v58  ;;  %v1218_v41 = vsub.f32 %v1204_v50, %v1634_v34  ;;  %v2090_v4 = vmul.f32 %v1070_v36, %v433_v29 }
  0x59   :  { %v148_v60 = vsel %vm3256_vm0, %v3304_v32, %v132_v26  ;;  %3305 = vst [vmem:[#allocation22_spill] sm:$0xff] %v2082_v49  ;;  %v2092_v3 = vmul.f32 %v1239_v61, %v470_v5  ;;  %v3308_v32 = vrot.slane %v1828_v57, 4  ;;  %v2099_v58 = vmul.f32 %v1240_v25, %v470_v5 }
  0x5a   :  { %635 = vrot.lane.b32.xlu1 %v1687_v12, %s1519_s6  ;;  %611 = vrot.lane.b32.xlu0 %v1689_v16, %s1519_s6  ;;  %3306 = vst [vmem:[#allocation23_spill] sm:$0xff] %v2090_v4  ;;  %v471_v50 = vsel %vm369_vm14, 5.4253473e-05, %v3297_v27  ;;  %v157_v29 = vsub.s32 %v148_v60, %v1973_v63  ;;  %v2109_v61 = vmul.f32 %v1071_v56, %v434_v38  ;;  %v1241_v57 = vand.u32 2147483647, %v1217_v52 }
  0x5b   :  { %3307 = vst [vmem:[#allocation24_spill] sm:$0xff] %v2092_v3  ;;  %v221_v53 = vsel %vm3258_vm1, %v3308_v32, %v205_v46  ;;  %3309 = vst [vmem:[#allocation25_spill] sm:$0xff] %v2099_v58  ;;  %v147_v5 = vsel %vm3256_vm0, %v132_v26, %v3237_v33  ;;  %v206_v25 = vrot.slane %v2025_v43, 4  ;;  %v2116_v32 = vmul.f32 %v1072_v40, %v434_v38 }
  0x5c   :  { %3310 = vst [vmem:[#allocation26_spill] sm:$0xff] %v2109_v61  ;;  %v1242_v19 = vand.u32 2147483647, %v1218_v41  ;;  %v230_v62 = vsub.s32 %v221_v53, %v1973_v63  ;;  %v286_v48 = vand.u32 4294967292, %v1973_v63  ;;  %v298_v56 = vand.u32 4294967292, %v148_v60 }
  0x5d   :  { %3311 = vst [vmem:[#allocation27_spill] sm:$0xff] %v2116_v32  ;;  %v334_v52 = vand.u32 4294967280, %v1973_v63  ;;  %v346_v36 = vand.u32 4294967280, %v221_v53  ;;  %v3312_v26 = vrot.slane %v1660_v59, 7  ;;  %v3313_v38 = vrot.slane %v1636_v35, 7 }
  0x5e   :  { %830 = vrot.lane.b32.xlu1 %v1687_v12, %s1517_s20  ;;  %806 = vrot.lane.b32.xlu0 %v1689_v16, %s1517_s20  ;;  %vm169_vm13 = vcmp.eq.s32.totalorder %v157_v29, 1  ;;  %vm181_vm15 = vcmp.eq.s32.totalorder %v157_v29, 4294967295  ;;  %v158_v41 = vsub.s32 %v147_v5, %v2025_v43  ;;  %v2133_v33 = vadd.s32 48, %v1592_v15 }
  0x5f   :  { %v1031_v40 = vsel %vm3256_vm0, %v3313_v38, %v3312_v26  ;;  %v2135_v32 = vmul.f32 %v1241_v57, %v471_v50  ;;  %v3315_v60 = vrot.slane %v1655_v55, 7  ;;  %v3316_v63 = vrot.slane %v1634_v34, 7  ;;  %vm2153_vm4 = vmor %vm169_vm13, %vm181_vm15 }
  0x60   :  { %v1170_v58 = vrot.slane %v1660_v59, 4  ;;  %v220_v26 = vsel %vm3258_vm1, %v205_v46, %v206_v25  ;;  %v2146_v29 = vmul.f32 %v1242_v19, %v471_v50  ;;  %vm242_vm2 = vcmp.eq.s32.totalorder %v230_v62, 4 }
  0x61   :  { %3314 = vst [vmem:[#allocation28_spill] sm:$0xff] %v2135_v32  ;;  %v1032_v53 = vsel %vm3256_vm0, %v3316_v63, %v3315_v60  ;;  %vm254_vm3 = vcmp.eq.s32.totalorder %v230_v62, 4294967292  ;;  %v1171_v38 = vrot.slane %v1655_v55, 4  ;;  %vm2157_vm5 = vcmp.eq.s32.totalorder %v286_v48, %v298_v56 }
  0x62   :  { %637 = vrot.lane.b32.xlu1 %v1697_v28, %s1519_s6  ;;  %613 = vrot.lane.b32.xlu0 %v1704_v39, %s1519_s6  ;;  %3317 = vst [vmem:[#allocation29_spill] sm:$0xff] %v2146_v29  ;;  %vm2161_vm9 = vcmp.eq.s32.totalorder %v334_v52, %v346_v36  ;;  %v287_v50 = vand.u32 4294967292, %v2025_v43  ;;  %v299_v19 = vand.u32 4294967292, %v147_v5  ;;  %vm170_vm10 = vcmp.eq.s32.totalorder %v158_v41, 1  ;;  %vm2168_vm7 = vmor %vm242_vm2, %vm254_vm3 }
  0x63   :  { %vm182_vm6 = vcmp.eq.s32.totalorder %v158_v41, 4294967295  ;;  %v231_v62 = vsub.s32 %v220_v26, %v2025_v43  ;;  %v3326_v48 = vrot.slane %v1636_v35, 4  ;;  %v1000_v56 = vrot.slane %v1689_v16, 7  ;;  %vm322_vm8 = vmand %vm2153_vm4, %vm2157_vm5 }
  0x64   :  { %v1049_v63 = vsub.f32 %v1031_v40, %v1660_v59  ;;  %v1050_v32 = vsub.f32 %v1032_v53, %v1655_v55  ;;  %v3327_v61 = vrot.slane %v1634_v34, 4  ;;  %vm2196_vm11 = vmor %vm170_vm10, %vm182_vm6  ;;  %vm2200_vm12 = vcmp.eq.s32.totalorder %v287_v50, %v299_v19 }
  0x65   :  { %v1201_v36 = vsel %vm3258_vm1, %v3326_v48, %v1170_v58  ;;  %v347_v53 = vand.u32 4294967280, %v220_v26  ;;  %vm370_vm14 = vmand %vm2168_vm7, %vm2161_vm9  ;;  %vm243_vm13 = vcmp.eq.s32.totalorder %v231_v62, 4  ;;  %vm255_vm15 = vcmp.eq.s32.totalorder %v231_v62, 4294967292 }
  0x66   :  { %832 = vrot.lane.b32.xlu1 %v1697_v28, %s1517_s20  ;;  %808 = vrot.lane.b32.xlu0 %v1704_v39, %s1517_s20  ;;  %v1202_v48 = vsel %vm3258_vm1, %v3327_v61, %v1171_v38  ;;  %v335_v61 = vand.u32 4294967280, %v2025_v43  ;;  %v1219_v41 = vsub.f32 %v1201_v36, %v1660_v59  ;;  %v3332_v52 = vrot.slane %v2133_v33, 7  ;;  %vm323_vm2 = vmand %vm2196_vm11, %vm2200_vm12 }
  0x67   :  { %v3333_v50 = vrot.slane %v2025_v43, 7  ;;  %v1220_v26 = vsub.f32 %v1202_v48, %v1655_v55  ;;  %v3334_v4 = vrot.slane %v1660_v59, 7  ;;  %v3335_v18 = vrot.slane %v1687_v12, 7  ;;  %vm2257_vm3 = vmor %vm243_vm13, %vm255_vm15 }
  0x68   :  { %v3336_v36 = vrot.slane %v1655_v55, 7  ;;  %v3337_v11 = vrot.slane %v2133_v33, 4  ;;  %v1074_v48 = vand.u32 2147483647, %v1050_v32  ;;  %vm2261_vm4 = vcmp.eq.s32.totalorder %v335_v61, %v347_v53 }
  0x69   :  { %v146_v19 = vsel %vm3256_vm0, %v3333_v50, %v3332_v52  ;;  %v1029_v3 = vsel %vm3256_vm0, %v3334_v4, %v1000_v56  ;;  %v435_v52 = vsel %vm322_vm8, 5.4253473e-05, %v3297_v27  ;;  %v1073_v4 = vand.u32 2147483647, %v1049_v63  ;;  %vm371_vm5 = vmand %vm2257_vm3, %vm2261_vm4 }
  0x6a   :  { %639 = vrot.lane.b32.xlu1 %v1710_v44, %s1519_s6  ;;  %615 = vrot.lane.b32.xlu0 %v1712_v45, %s1519_s6  ;;  %v1030_v49 = vsel %vm3256_vm0, %v3336_v36, %v3335_v18  ;;  %v219_v43 = vsel %vm3258_vm1, %v206_v25, %v3337_v11  ;;  %v3338_v18 = vrot.slane %v1689_v16, 4  ;;  %v472_v11 = vsel %vm370_vm14, 5.4253473e-05, %v3297_v27 }
  0x6b   :  { %v3343_v32 = vrot.slane %v1687_v12, 4  ;;  %v159_v29 = vsub.s32 %v146_v19, %v2133_v33  ;;  %v1243_v60 = vand.u32 2147483647, %v1219_v41  ;;  %v1051_v46 = vsub.f32 %v1029_v3, %v1689_v16 }
  0x6c   :  { %v1199_v50 = vsel %vm3258_vm1, %v1170_v58, %v3338_v18  ;;  %v1052_v62 = vsub.f32 %v1030_v49, %v1687_v12  ;;  %v232_v63 = vsub.s32 %v219_v43, %v2133_v33  ;;  %v1244_v5 = vand.u32 2147483647, %v1220_v26 }
  0x6d   :  { %v1200_v57 = vsel %vm3258_vm1, %v1171_v38, %v3343_v32  ;;  %v436_v40 = vsel %vm323_vm2, 5.4253473e-05, %v3297_v27  ;;  %v1221_v61 = vsub.f32 %v1199_v50, %v1689_v16  ;;  %v3240_v53 = vrot.slane %v1704_v39, 7 }
  0x6e   :  { %834 = vrot.lane.b32.xlu1 %v1710_v44, %s1517_s20  ;;  %810 = vrot.lane.b32.xlu0 %v1712_v45, %s1517_s20  ;;  %v1222_v38 = vsub.f32 %v1200_v57, %v1687_v12  ;;  %v288_v3 = vand.u32 4294967292, %v2133_v33  ;;  %v300_v41 = vand.u32 4294967292, %v146_v19  ;;  %v2283_v49 = vadd.s32 56, %v1592_v15 }
  0x6f   :  { %vm171_vm9 = vcmp.eq.s32.totalorder %v159_v29, 1  ;;  %vm183_vm10 = vcmp.eq.s32.totalorder %v159_v29, 4294967295  ;;  %v336_v26 = vand.u32 4294967280, %v2133_v33  ;;  %v348_v36 = vand.u32 4294967280, %v219_v43 }
  0x70   :  { %v1075_v18 = vand.u32 2147483647, %v1051_v46  ;;  %v1076_v50 = vand.u32 2147483647, %v1052_v62  ;;  %vm244_vm6 = vcmp.eq.s32.totalorder %v232_v63, 4  ;;  %vm256_vm7 = vcmp.eq.s32.totalorder %v232_v63, 4294967292  ;;  %vm2297_vm8 = vmor %vm171_vm9, %vm183_vm10 }
  0x71   :  { %v473_v19 = vsel %vm371_vm5, 5.4253473e-05, %v3297_v27  ;;  %v1003_v25 = vrot.slane %v1697_v28, 7  ;;  %v1027_v58 = vsel %vm3256_vm0, %v1000_v56, %v3240_v53  ;;  %v1245_v57 = vand.u32 2147483647, %v1221_v61  ;;  %vm2310_vm12 = vmor %vm244_vm6, %vm256_vm7 }
  0x72   :  { %641 = vrot.lane.b32.xlu1 %v1720_v51, %s1519_s6  ;;  %617 = vrot.lane.b32.xlu0 %v1772_v37, %s1519_s6  ;;  %v1246_v29 = vand.u32 2147483647, %v1222_v38  ;;  %vm2301_vm11 = vcmp.eq.s32.totalorder %v288_v3, %v300_v41  ;;  %v135_v46 = vrot.slane %v2283_v49, 7  ;;  %vm2314_vm14 = vcmp.eq.s32.totalorder %v336_v26, %v348_v36 }
  0x73   :  { %v1175_v63 = vrot.slane %v1697_v28, 4  ;;  %v208_v61 = vrot.slane %v2283_v49, 4  ;;  %v2321_v38 = vadd.s32 64, %v1592_v15  ;;  %v2323_v3 = vmul.f32 %v1073_v4, %v435_v52  ;;  %vm324_vm13 = vmand %vm2297_vm8, %vm2301_vm11 }
  0x74   :  { %v2325_v41 = vmul.f32 %v1074_v48, %v435_v52  ;;  %v2327_v53 = vmul.f32 %v1243_v60, %v472_v11  ;;  %v1053_v32 = vsub.f32 %v1027_v58, %v1704_v39  ;;  %v2330_v59 = vmul.f32 %v1244_v5, %v472_v11  ;;  %vm372_vm15 = vmand %vm2310_vm12, %vm2314_vm14 }
  0x75   :  { %v2332_v26 = vmul.f32 %v1075_v18, %v436_v40  ;;  %v3356_v36 = vrot.slane %v1687_v12, 7  ;;  %v3357_v52 = vrot.slane %v1704_v39, 4  ;;  %v3358_v48 = vrot.slane %v1689_v16, 4 }
  0x76   :  { %836 = vrot.lane.b32.xlu1 %v1720_v51, %s1517_s20  ;;  %812 = vrot.lane.b32.xlu0 %v1772_v37, %s1517_s20  ;;  %3352 = vst [vmem:[#allocation30_spill] sm:$0xff] %v2325_v41  ;;  %3353 = vst [vmem:[#allocation31_spill] sm:$0xff] %v2327_v53  ;;  %v2348_v60 = vmul.f32 %v1076_v50, %v436_v40  ;;  %v2350_v5 = vmul.f32 %v1245_v57, %v473_v19  ;;  %v3362_v58 = vrot.slane %v2133_v33, 7 }
  0x77   :  { %3354 = vst [vmem:[#allocation32_spill] sm:$0xff] %v2330_v59  ;;  %3355 = vst [vmem:[#allocation33_spill] sm:$0xff] %v2332_v26  ;;  %v1028_v4 = vsel %vm3256_vm0, %v3356_v36, %v1003_v25  ;;  %v1197_v11 = vsel %vm3258_vm1, %v3358_v48, %v3357_v52  ;;  %v2352_v18 = vmul.f32 %v1246_v29, %v473_v19  ;;  %v3363_v40 = vrot.slane %v1687_v12, 4 }
  0x78   :  { %3359 = vst [vmem:[#allocation34_spill] sm:$0xff] %v2348_v60  ;;  %3360 = vst [vmem:[#allocation35_spill] sm:$0xff] %v2350_v5  ;;  %v145_v36 = vsel %vm3256_vm0, %v3362_v58, %v135_v46  ;;  %v3364_v19 = vrot.slane %v2133_v33, 4  ;;  %v1004_v29 = vrot.slane %v1712_v45, 7  ;;  %v1054_v62 = vsub.f32 %v1028_v4, %v1697_v28 }
  0x79   :  { %3361 = vst [vmem:[#allocation36_spill] sm:$0xff] %v2352_v18  ;;  %v2370_v50 = vsel %vm3258_vm1, %v3363_v40, %v1175_v63  ;;  %v1077_v52 = vand.u32 2147483647, %v1053_v32  ;;  %v1223_v48 = vsub.f32 %v1197_v11, %v1704_v39  ;;  %v1005_v58 = vrot.slane %v1710_v44, 7 }
  0x7a   :  { %643 = vrot.lane.b32.xlu1 %v1774_v30, %s1519_s6  ;;  %619 = vrot.lane.b32.xlu0 %v1800_v0, %s1519_s6  ;;  %v218_v57 = vsel %vm3258_vm1, %v3364_v19, %v208_v61  ;;  %v2387_v33 = vsel %vm324_vm13, 5.4253473e-05, %v3297_v27  ;;  %v2390_v40 = vsel %vm372_vm15, 5.4253473e-05, %v3297_v27  ;;  %v160_v19 = vsub.s32 %v145_v36, %v2283_v49 }
  0x7b   :  { %v1224_v32 = vsub.f32 %v2370_v50, %v1697_v28  ;;  %v233_v11 = vsub.s32 %v218_v57, %v2283_v49  ;;  %v289_v56 = vand.u32 4294967292, %v2283_v49  ;;  %v337_v55 = vand.u32 4294967280, %v2283_v49 }
  0x7c   :  { %v301_v43 = vand.u32 4294967292, %v145_v36  ;;  %v3365_v18 = vrot.slane %v2321_v38, 7  ;;  %v1078_v5 = vand.u32 2147483647, %v1054_v62  ;;  %v2405_v4 = vmul.f32 %v1077_v52, %v2387_v33 }
  0x7d   :  { %v2407_v50 = vand.u32 2147483647, %v1223_v48  ;;  %v1177_v59 = vrot.slane %v1710_v44, 4  ;;  %vm172_vm2 = vcmp.eq.s32.totalorder %v160_v19, 1  ;;  %v3367_v49 = vrot.slane %v1704_v39, 7 }
  0x7e   :  { %838 = vrot.lane.b32.xlu1 %v1774_v30, %s1517_s20  ;;  %814 = vrot.lane.b32.xlu0 %v1800_v0, %s1517_s20  ;;  %v144_v60 = vsel %vm3256_vm0, %v135_v46, %v3365_v18  ;;  %3366 = vst [vmem:[#allocation37_spill] sm:$0xff] %v2405_v4  ;;  %v3368_v26 = vrot.slane %v2321_v38, 4  ;;  %vm184_vm3 = vcmp.eq.s32.totalorder %v160_v19, 4294967295  ;;  %vm245_vm4 = vcmp.eq.s32.totalorder %v233_v11, 4 }
  0x7f   :  { %v1025_v36 = vsel %vm3256_vm0, %v3367_v49, %v1004_v29  ;;  %vm257_vm5 = vcmp.eq.s32.totalorder %v233_v11, 4294967292  ;;  %v161_v18 = vsub.s32 %v144_v60, %v2321_v38  ;;  %vm2421_vm9 = vcmp.eq.s32.totalorder %v289_v56, %v301_v43  ;;  %vm2440_vm6 = vmor %vm172_vm2, %vm184_vm3 }
  0x80   :  { %v217_v46 = vsel %vm3258_vm1, %v208_v61, %v3368_v26  ;;  %v1196_v26 = vsel %vm3258_vm1, %v1175_v63, %v1177_v59  ;;  %v290_v56 = vand.u32 4294967292, %v2321_v38  ;;  %v2447_v61 = vadd.s32 72, %v1592_v15  ;;  %vm2453_vm11 = vmor %vm245_vm4, %vm257_vm5 }
  0x81   :  { %v234_v49 = vsub.s32 %v217_v46, %v2321_v38  ;;  %v1055_v63 = vsub.f32 %v1025_v36, %v1712_v45  ;;  %vm173_vm7 = vcmp.eq.s32.totalorder %v161_v18, 1  ;;  %vm185_vm8 = vcmp.eq.s32.totalorder %v161_v18, 4294967295  ;;  %vm325_vm12 = vmand %vm2440_vm6, %vm2421_vm9 }
  0x82   :  { %645 = vrot.lane.b32.xlu1 %v1814_v47, %s1519_s6  ;;  %621 = vrot.lane.b32.xlu0 %v1848_v17, %s1519_s6  ;;  %v338_v4 = vand.u32 4294967280, %v2321_v38  ;;  %v3378_v43 = vrot.slane %v1772_v37, 7  ;;  %v1226_v11 = vsub.f32 %v1196_v26, %v1710_v44  ;;  %vm117_vm15 = vcmp.lt.s32.totalorder %v1563_v1, 16  ;;  %vm2478_vm2 = vmor %vm173_vm7, %vm185_vm8 }
  0x83   :  { %vm246_vm14 = vcmp.eq.s32.totalorder %v234_v49, 4  ;;  %vm258_vm13 = vcmp.eq.s32.totalorder %v234_v49, 4294967292  ;;  %v3254_v18 = vrot.slane %v2447_v61, 7  ;;  %vm3257_vm4 = vcmp.lt.s32.totalorder %v1563_v1, 1 }
  0x84   :  { %v1023_v36 = vsel %vm3256_vm0, %v1004_v29, %v3378_v43  ;;  %v3384_v43 = vrot.slane %v1772_v37, 4  ;;  %v1248_v53 = vand.u32 2147483647, %v1224_v32  ;;  %vm2509_vm7 = vmor %vm246_vm14, %vm258_vm13 }
  0x85   :  { %v1057_v28 = vsub.f32 %v1023_v36, %v1772_v37 }
  0x86   :  { %840 = vrot.lane.b32.xlu1 %v1814_v47, %s1517_s20  ;;  %816 = vrot.lane.b32.xlu0 %v1848_v17, %s1517_s20  ;;  %v2545_v29 = vmul.f32 %v1248_v53, %v2390_v40 }
  0x87   :  { %v1081_v52 = vand.u32 2147483647, %v1057_v28 }
  0x88   :  { %3391 = vst [vmem:[#allocation38_spill] sm:$0xff] %v2545_v29 }
  0x8a   :  { %647 = vrot.lane.b32.xlu1 %v1673_v7, %s1519_s6  ;;  %623 = vrot.lane.b32.xlu0 %v1699_v31, %s1519_s6 }
  0x8e   :  { %842 = vrot.lane.b32.xlu1 %v1673_v7, %s1517_s20  ;;  %818 = vrot.lane.b32.xlu0 %v1699_v31, %s1517_s20  ;;  %v349_v7 = vand.u32 4294967280, %v218_v57  ;;  %v1176_v31 = vrot.slane %v1712_v45, 4  ;;  %v1026_v57 = vsel %vm3256_vm0, %v1003_v25, %v1005_v58  ;;  %v3373_v25 = vrot.slane %v1704_v39, 4 }
  0x8f   :  { %v1056_v41 = vsub.f32 %v1026_v57, %v1710_v44  ;;  %v3379_v57 = vrot.slane %v1720_v51, 7 }
  0x90   :  { %vm2425_vm10 = vcmp.eq.s32.totalorder %v337_v55, %v349_v7  ;;  %v1195_v48 = vsel %vm3258_vm1, %v3373_v25, %v1176_v31  ;;  %v302_v55 = vand.u32 4294967292, %v144_v60  ;;  %v350_v25 = vand.u32 4294967280, %v217_v46 }
  0x91   :  { %v1225_v60 = vsub.f32 %v1195_v48, %v1712_v45  ;;  %v1024_v48 = vsel %vm3256_vm0, %v1005_v58, %v3379_v57  ;;  %v1193_v58 = vsel %vm3258_vm1, %v1176_v31, %v3384_v43  ;;  %v3385_v57 = vrot.slane %v1720_v51, 4  ;;  %vm373_vm5 = vmand %vm2453_vm11, %vm2425_vm10 }
  0x92   :  { %vm2482_vm3 = vcmp.eq.s32.totalorder %v290_v56, %v302_v55  ;;  %v1079_v56 = vand.u32 2147483647, %v1055_v63  ;;  %v1080_v55 = vand.u32 2147483647, %v1056_v41  ;;  %vm2513_vm8 = vcmp.eq.s32.totalorder %v338_v4, %v350_v25 }
  0x93   :  { %v1194_v44 = vsel %vm3258_vm1, %v1177_v59, %v3385_v57  ;;  %v438_v59 = vsel %vm325_vm12, 5.4253473e-05, %v3297_v27  ;;  %v1058_v41 = vsub.f32 %v1024_v48, %v1720_v51  ;;  %v3253_v63 = vrot.slane %v2447_v61, 4  ;;  %vm326_vm9 = vmand %vm2478_vm2, %vm2482_vm3 }
  0x94   :  { %v2520_v7 = vmul.f32 %v1078_v5, %v2387_v33  ;;  %v1249_v62 = vand.u32 2147483647, %v1225_v60  ;;  %v1227_v49 = vsub.f32 %v1193_v58, %v1772_v37  ;;  %v1228_v4 = vsub.f32 %v1194_v44, %v1720_v51  ;;  %vm374_vm10 = vmand %vm2509_vm7, %vm2513_vm8 }
  0x95   :  { %v2530_v48 = vmul.f32 %v2407_v50, %v2390_v40  ;;  %v475_v5 = vsel %vm373_vm5, 5.4253473e-05, %v3297_v27  ;;  %v1250_v33 = vand.u32 2147483647, %v1226_v11  ;;  %v3390_v60 = vrot.slane %v2321_v38, 7 }
  0x96   :  { %v2547_v50 = vmul.f32 %v1079_v56, %v438_v59  ;;  %v2549_v26 = vmul.f32 %v1080_v55, %v438_v59  ;;  %v439_v19 = vsel %vm326_vm9, 5.4253473e-05, %v3297_v27  ;;  %v1082_v11 = vand.u32 2147483647, %v1058_v41 }
  0x97   :  { %v143_v44 = vsel %vm3256_vm0, %v3390_v60, %v3254_v18  ;;  %v3393_v43 = vrot.slane %v2321_v38, 4  ;;  %v3255_v40 = vrot.slane %v1800_v0, 7  ;;  %v2563_v58 = vmul.f32 %v1249_v62, %v475_v5 }
  0x98   :  { %3392 = vst [vmem:[#allocation39_spill] sm:$0xff] %v2549_v26  ;;  %v1251_v57 = vand.u32 2147483647, %v1227_v49  ;;  %v1252_v56 = vand.u32 2147483647, %v1228_v4  ;;  %v162_v55 = vsub.s32 %v143_v44, %v2447_v61  ;;  %v2566_v31 = vmul.f32 %v1250_v33, %v475_v5 }
  0x99   :  { %v216_v53 = vsel %vm3258_vm1, %v3393_v43, %v3253_v63  ;;  %3394 = vst [vmem:[#allocation40_spill] sm:$0xff] %v2563_v58  ;;  %v476_v32 = vsel %vm374_vm10, 5.4253473e-05, %v3297_v27  ;;  %v2571_v60 = vmul.f32 %v1081_v52, %v439_v19  ;;  %v291_v62 = vand.u32 4294967292, %v2447_v61 }
  0x9a   :  { %3395 = vst [vmem:[#allocation41_spill] sm:$0xff] %v2566_v31  ;;  %v235_v43 = vsub.s32 %v216_v53, %v2447_v61  ;;  %v303_v49 = vand.u32 4294967292, %v143_v44  ;;  %v2575_v4 = vmul.f32 %v1082_v11, %v439_v19  ;;  %v339_v63 = vand.u32 4294967280, %v2447_v61 }
  0x9b   :  { %3396 = vst [vmem:[#allocation42_spill] sm:$0xff] %v2571_v60  ;;  %v351_v18 = vand.u32 4294967280, %v216_v53  ;;  %v3398_v5 = vrot.slane %v1772_v37, 7  ;;  %v2587_v38 = vmul.f32 %v1251_v57, %v476_v32  ;;  %v2589_v41 = vmul.f32 %v1252_v56, %v476_v32 }
  0x9c   :  { %v2473_v46 = vpop.permute.xlu1 %113  ;;  %v2475_v45 = vpop.permute.xlu0 %98  ;;  %3397 = vst [vmem:[#allocation43_spill] sm:$0xff] %v2575_v4  ;;  %vm174_vm6 = vcmp.eq.s32.totalorder %v162_v55, 1  ;;  %vm186_vm11 = vcmp.eq.s32.totalorder %v162_v55, 4294967295  ;;  %v3401_v53 = vrot.slane %v1774_v30, 7  ;;  %v3403_v57 = vrot.slane %v1800_v0, 4 }
  0x9d   :  { %v1021_v33 = vsel %vm3256_vm0, %v3398_v5, %v3255_v40  ;;  %3399 = vst [vmem:[#allocation44_spill] sm:$0xff] %v2587_v38  ;;  %3400 = vst [vmem:[#allocation45_spill] sm:$0xff] %v2589_v41  ;;  %v3402_v5 = vrot.slane %v1720_v51, 7  ;;  %v3404_v56 = vrot.slane %v1772_v37, 4  ;;  %vm247_vm12 = vcmp.eq.s32.totalorder %v235_v43, 4 }
  0x9e   :  { %vm2611_vm14 = vcmp.eq.s32.totalorder %v291_v62, %v303_v49  ;;  %v1059_v38 = vsub.f32 %v1021_v33, %v1800_v0  ;;  %vm259_vm13 = vcmp.eq.s32.totalorder %v235_v43, 4294967292  ;;  %vm2620_vm2 = vcmp.eq.s32.totalorder %v339_v63, %v351_v18  ;;  %vm2634_vm3 = vmor %vm174_vm6, %vm186_vm11 }
  0x9f   :  { %v1022_v40 = vsel %vm3256_vm0, %v3402_v5, %v3401_v53  ;;  %v2606_v32 = vsel %vm3258_vm1, %v3404_v56, %v3403_v57  ;;  %v2639_v63 = vadd.s32 80, %v1592_v15  ;;  %vm2647_vm5 = vmor %vm247_vm12, %vm259_vm13 }
  0xa0   :  { %v116_v25 = vpop.permute.xlu1 %115  ;;  %v101_v36 = vpop.permute.xlu0 %100  ;;  %v1229_v49 = vsub.f32 %v2606_v32, %v1800_v0  ;;  %v1083_v55 = vand.u32 2147483647, %v1059_v38  ;;  %vm327_vm6 = vmand %vm2634_vm3, %vm2611_vm14 }
  0xa1   :  { %v119_v52 = vsel %vm117_vm15, %v116_v25, %v2473_v46  ;;  %v104_v44 = vsel %vm3257_vm4, %v101_v36, %v2475_v45  ;;  %v103_v41 = vsel %vm3257_vm4, %v2475_v45, %v101_v36  ;;  %v118_v53 = vsel %vm117_vm15, %v2473_v46, %v116_v25  ;;  %vm3431_vm3 = vmand %vm2647_vm5, %vm2620_vm2 }
  0xa2   :  { %v120_v5 = vsub.s32 %v119_v52, %v1563_v1  ;;  %v105_v45 = vsub.s32 %v104_v44, %v1563_v1  ;;  %v1060_v36 = vsub.f32 %v1022_v40, %v1774_v30  ;;  %v106_v33 = vsub.s32 %v103_v41, %v1570_v2 }
  0xa3   :  { %v121_v56 = vsub.s32 %v118_v53, %v1570_v2  ;;  %v276_v32 = vand.u32 4294967280, %v104_v44  ;;  %v277_v60 = vand.u32 4294967280, %v103_v41  ;;  %vm3437_vm5 = vcmp.lt.s32.totalorder %v1592_v15, 1 }
  0xa4   :  { %v626_v59 = vpop.permute.xlu1 %625  ;;  %v602_v28 = vpop.permute.xlu0 %601  ;;  %vm122_vm7 = vcmp.eq.s32.totalorder %v120_v5, 16  ;;  %vm124_vm8 = vcmp.eq.s32.totalorder %v120_v5, 4294967280  ;;  %vm107_vm9 = vcmp.eq.s32.totalorder %v105_v45, 1  ;;  %vm109_vm10 = vcmp.eq.s32.totalorder %v105_v45, 4294967295 }
  0xa5   :  { %v664_v26 = vsel %vm3257_vm4, %v626_v59, %v602_v28  ;;  %v652_v44 = vsel %vm3257_vm4, %v602_v28, %v626_v59  ;;  %vm110_vm12 = vcmp.eq.s32.totalorder %v106_v33, 4294967295  ;;  %v3413_v59 = vrot.slane %v1774_v30, 4  ;;  %vm2673_vm11 = vmor %vm122_vm7, %vm124_vm8 }
  0xa6   :  { %v3414_v28 = vrot.slane %v1720_v51, 4  ;;  %vm123_vm0 = vcmp.eq.s32.totalorder %v121_v56, 16  ;;  %vm125_vm4 = vcmp.eq.s32.totalorder %v121_v56, 4294967280  ;;  %vm2682_vm13 = vmor %vm107_vm9, %vm109_vm10  ;;  %v677_v5 = vsub.f32 %v652_v44, %v1576_v6 }
  0xa7   :  { %vm3422_vm7 = vcmp.eq.s32.totalorder %v106_v33, 1  ;;  %vm3428_vm10 = vcmp.lt.s32.totalorder %v1563_v1, 1  ;;  %v1084_v18 = vand.u32 2147483647, %v1060_v36  ;;  %vm2715_vm14 = vmor %vm123_vm0, %vm125_vm4  ;;  %v2739_v31 = vsel %vm2673_vm11, 4.340278e-05, %v3297_v27 }
  0xa8   :  { %v821_v19 = vpop.permute.xlu1 %820  ;;  %v797_v11 = vpop.permute.xlu0 %796  ;;  %vm2702_vm8 = vmor %vm3422_vm7, %vm110_vm12  ;;  %v701_v57 = vand.u32 2147483647, %v677_v5  ;;  %v3440_v44 = vrot.slane %v2447_v61, 7 }
  0xa9   :  { %v857_v46 = vsel %vm117_vm15, %v821_v19, %v797_v11  ;;  %v845_v62 = vsel %vm117_vm15, %v797_v11, %v821_v19  ;;  %v1192_v11 = vsel %vm3258_vm1, %v3414_v28, %v3413_v59  ;;  %v3419_v59 = vand.u32 4294967280, %v1563_v1  ;;  %vm3441_vm11 = vmmov %vm3437_vm5 }
  0xaa   :  { %v869_v19 = vsub.f32 %v857_v46, %v1578_v8  ;;  %v870_v38 = vsub.f32 %v845_v62, %v1576_v6  ;;  %v676_v62 = vsub.f32 %v664_v26, %v1578_v8  ;;  %v440_v8 = vsel %vm327_vm6, 5.4253473e-05, %v3297_v27  ;;  %vm3445_vm12 = vmmov %vm3437_vm5 }
  0xab   :  { %vm2688_vm1 = vcmp.eq.s32.totalorder %v3419_v59, %v276_v32  ;;  %v3425_v32 = vand.u32 4294967280, %v1570_v2  ;;  %v2726_v2 = vsel %vm3431_vm3, 5.4253473e-05, %v3297_v27  ;;  %v2733_v56 = vmul.f32 %v1083_v55, %v440_v8 }
  0xac   :  { %v628_v25 = vpop.permute.xlu1 %627  ;;  %v604_v52 = vpop.permute.xlu0 %603  ;;  %v893_v6 = vand.u32 2147483647, %v869_v19  ;;  %v894_v33 = vand.u32 2147483647, %v870_v38  ;;  %vm280_vm0 = vmand %vm2682_vm13, %vm2688_vm1  ;;  %v700_v36 = vand.u32 2147483647, %v676_v62  ;;  %v2756_v62 = vmul.f32 %v1084_v18, %v440_v8 }
  0xad   :  { %vm2708_vm9 = vcmp.eq.s32.totalorder %v3425_v32, %v277_v60  ;;  %v665_v4 = vsel %vm3428_vm10, %v628_v25, %v604_v52  ;;  %v1230_v60 = vsub.f32 %v1192_v11, %v1774_v30  ;;  %v1253_v19 = vand.u32 2147483647, %v1229_v49  ;;  %vm3432_vm1 = vmmov %vm3428_vm10 }
  0xae   :  { %vm281_vm4 = vmand %vm2702_vm8, %vm2708_vm9  ;;  %v678_v40 = vsub.f32 %v665_v4, %v1590_v14  ;;  %v2751_v49 = vsel %vm2715_vm14, 4.340278e-05, %v3297_v27  ;;  %v942_v11 = vmul.f32 %v893_v6, %v2739_v31  ;;  %v653_v53 = vsel %vm3432_vm1, %v604_v52, %v628_v25  ;;  %3433 = vst [vmem:[#allocation46_spill] sm:$0xff] %v2756_v62 }
  0xaf   :  { %vm3434_vm2 = vmmov %vm3432_vm1  ;;  %v2765_v45 = vsel %vm281_vm4, 4.340278e-05, %v3297_v27  ;;  %v679_v59 = vsub.f32 %v653_v53, %v1588_v13  ;;  %v1254_v53 = vand.u32 2147483647, %v1230_v60  ;;  %v3443_v60 = vrot.slane %v1814_v47, 7 }
  0xb0   :  { %v823_v41 = vpop.permute.xlu1 %822  ;;  %v799_v43 = vpop.permute.xlu0 %798  ;;  %v749_v8 = vmul.f32 %v701_v57, %v2765_v45  ;;  %vm3438_vm6 = vmmov %vm3432_vm1 }
  0xb1   :  { %v858_v46 = vsel %vm117_vm15, %v823_v41, %v799_v43  ;;  %v846_v55 = vsel %vm117_vm15, %v799_v43, %v823_v41  ;;  %vm3446_vm13 = vmmov %vm3432_vm1 }
  0xb2   :  { %v871_v26 = vsub.f32 %v858_v46, %v1590_v14  ;;  %v2759_v46 = vsel %vm280_vm0, 4.340278e-05, %v3297_v27  ;;  %v943_v14 = vmul.f32 %v894_v33, %v2751_v49  ;;  %v872_v25 = vsub.f32 %v846_v55, %v1588_v13  ;;  %vm3447_vm7 = vmmov %vm3432_vm1 }
  0xb3   :  { %v748_v32 = vmul.f32 %v700_v36, %v2759_v46  ;;  %v3435_v33 = vrot.slane %v1848_v17, 7  ;;  %v3436_v36 = vrot.slane %v1800_v0, 7  ;;  %vm3450_vm8 = vmmov %vm3437_vm5 }
  0xb4   :  { %v630_v58 = vpop.permute.xlu1 %629  ;;  %v606_v29 = vpop.permute.xlu0 %605  ;;  %v895_v28 = vand.u32 2147483647, %v871_v26  ;;  %v702_v26 = vand.u32 2147483647, %v678_v40  ;;  %v967_v38 = vadd.f32 %v943_v14, %v749_v8  ;;  %vm3451_vm9 = vmmov %vm3432_vm1 }
  0xb5   :  { %v666_v41 = vsel %vm3434_vm2, %v630_v58, %v606_v29  ;;  %v966_v4 = vadd.f32 %v942_v11, %v748_v32  ;;  %v2782_v55 = vsel %vm3437_vm5, %v3436_v36, %v3435_v33  ;;  %vm3455_vm3 = vmmov %vm3432_vm1 }
  0xb6   :  { %v680_v18 = vsub.f32 %v666_v41, %v1607_v22  ;;  %v944_v57 = vmul.f32 %v895_v28, %v2739_v31  ;;  %v654_v41 = vsel %vm3438_vm6, %v606_v29, %v630_v58  ;;  %v703_v28 = vand.u32 2147483647, %v679_v59  ;;  %vm3457_vm0 = vmmov %vm3432_vm1 }
  0xb7   :  { %v750_v8 = vmul.f32 %v702_v26, %v2759_v46  ;;  %v1138_v58 = vadd.f32 %v1900_v9, %v966_v4  ;;  %v1139_v26 = vadd.f32 %v1885_v24, %v967_v38  ;;  %vm3465_vm1 = vcmp.lt.s32.totalorder %v1592_v15, 4  ;;  %vm3467_vm2 = vmmov %vm3457_vm0 }
  0xb8   :  { %v825_v43 = vpop.permute.xlu1 %824  ;;  %v801_v5 = vpop.permute.xlu0 %800  ;;  %v751_v24 = vmul.f32 %v703_v28, %v2765_v45  ;;  %vm3469_vm5 = vmmov %vm3465_vm1 }
  0xb9   :  { %v859_v52 = vsel %vm117_vm15, %v825_v43, %v801_v5  ;;  %v847_v13 = vsel %vm117_vm15, %v801_v5, %v825_v43  ;;  %v2799_v43 = vmul.f32 %v1253_v19, %v2726_v2  ;;  %v3444_v5 = vrot.slane %v1774_v30, 7  ;;  %vm3472_vm6 = vmmov %vm3457_vm0 }
  0xba   :  { %v873_v6 = vsub.f32 %v859_v52, %v1607_v22  ;;  %v896_v22 = vand.u32 2147483647, %v872_v25  ;;  %v3439_v52 = vrot.slane %v2639_v63, 7  ;;  %v704_v25 = vand.u32 2147483647, %v680_v18 }
  0xbb   :  { %3442 = vst [vmem:[#allocation47_spill] sm:$0xff] %v2799_v43  ;;  %v2807_v29 = vsel %vm3445_vm12, %v3444_v5, %v3443_v60  ;;  %v968_v19 = vadd.f32 %v944_v57, %v750_v8  ;;  %v1309_v8 = vadd.f32 %v1895_v42, %v1139_v26  ;;  %v3448_v42 = vrot.slane %v1599_v20, 7 }
  0xbc   :  { %v632_v40 = vpop.permute.xlu1 %631  ;;  %v608_v11 = vpop.permute.xlu0 %607  ;;  %v897_v32 = vand.u32 2147483647, %v873_v6  ;;  %v2795_v14 = vsel %vm3441_vm11, %v3440_v44, %v3439_v52  ;;  %v874_v6 = vsub.f32 %v847_v13, %v1605_v21  ;;  %v681_v44 = vsub.f32 %v654_v41, %v1605_v21 }
  0xbd   :  { %v667_v59 = vsel %vm3446_vm13, %v632_v40, %v608_v11  ;;  %v2817_v52 = vsub.s32 %v2795_v14, %v2639_v63  ;;  %v945_v60 = vmul.f32 %v896_v22, %v2751_v49  ;;  %v304_v18 = vand.u32 4294967292, %v2795_v14  ;;  %vm3476_vm13 = vmmov %vm3457_vm0 }
  0xbe   :  { %v946_v9 = vmul.f32 %v897_v32, %v2739_v31  ;;  %v682_v38 = vsub.f32 %v667_v59, %v1636_v35  ;;  %v1061_v21 = vsub.f32 %v2782_v55, %v1848_v17  ;;  %v1062_v57 = vsub.f32 %v2807_v29, %v1814_v47 }
  0xbf   :  { %v1308_v13 = vadd.f32 %v2061_v23, %v1138_v58  ;;  %v752_v22 = vmul.f32 %v704_v25, %v2759_v46  ;;  %v898_v41 = vand.u32 2147483647, %v874_v6  ;;  %v1140_v14 = vadd.f32 %v2002_v54, %v968_v19 }
  0xc0   :  { %v827_v33 = vpop.permute.xlu1 %826  ;;  %v803_v36 = vpop.permute.xlu0 %802  ;;  %v705_v28 = vand.u32 2147483647, %v681_v44  ;;  %v969_v62 = vadd.f32 %v945_v60, %v751_v24  ;;  %v2838_v23 = vmul.f32 %v1254_v53, %v2726_v2  ;;  %v655_v58 = vsel %vm3447_vm7, %v608_v11, %v632_v40  ;;  %v3453_v24 = vld [vmem:[#allocation22_spill] sm:$0xff] }
  0xc1   :  { %v860_v4 = vsel %vm117_vm15, %v827_v33, %v803_v36  ;;  %v848_v5 = vsel %vm117_vm15, %v803_v36, %v827_v33  ;;  %v970_v43 = vadd.f32 %v946_v9, %v752_v22  ;;  %v3449_v54 = vrot.slane %v2639_v63, 7  ;;  %v3452_v9 = vld [vmem:[#allocation20_spill] sm:$0xff] }
  0xc2   :  { %v875_v32 = vsub.f32 %v860_v4, %v1636_v35  ;;  %v706_v35 = vand.u32 2147483647, %v682_v38  ;;  %v211_v6 = vrot.slane %v2639_v63, 4  ;;  %v947_v26 = vmul.f32 %v898_v41, %v2751_v49 }
  0xc3   :  { %v2848_v25 = vsel %vm3450_vm8, %v3449_v54, %v3448_v42  ;;  %v876_v19 = vsub.f32 %v848_v5, %v1634_v34  ;;  %v293_v40 = vand.u32 4294967292, %v1599_v20  ;;  %v1383_v11 = vadd.f32 %v1309_v8, %v1308_v13  ;;  %v3454_v13 = vld [vmem:[#allocation14_spill] sm:$0xff] }
  0xc4   :  { %v634_v59 = vpop.permute.xlu1 %633  ;;  %v610_v55 = vpop.permute.xlu0 %609  ;;  %v899_v29 = vand.u32 2147483647, %v875_v32  ;;  %v1310_v53 = vadd.f32 %v2064_v10, %v1140_v14  ;;  %v753_v44 = vmul.f32 %v705_v28, %v2765_v45  ;;  %v1141_v4 = vadd.f32 %v3452_v9, %v969_v62  ;;  %v3463_v9 = vld [vmem:[#allocation23_spill] sm:$0xff] }
  0xc5   :  { %v668_v2 = vsel %vm3451_vm9, %v634_v59, %v610_v55  ;;  %v1142_v38 = vadd.f32 %v3453_v24, %v970_v43  ;;  %v683_v22 = vsub.f32 %v655_v58, %v1634_v34  ;;  %v754_v32 = vmul.f32 %v706_v35, %v2759_v46  ;;  %vm3481_vm9 = vmmov %vm3457_vm0 }
  0xc6   :  { %v948_v33 = vmul.f32 %v899_v29, %v2739_v31  ;;  %v684_v8 = vsub.f32 %v668_v2, %v3454_v13  ;;  %vm175_vm10 = vcmp.eq.s32.totalorder %v2817_v52, 1  ;;  %v971_v28 = vadd.f32 %v947_v26, %v753_v44  ;;  %v3456_v2 = vld [vmem:[#allocation13_spill] sm:$0xff] }
  0xc7   :  { %v900_v62 = vand.u32 2147483647, %v876_v19  ;;  %vm187_vm14 = vcmp.eq.s32.totalorder %v2817_v52, 4294967295  ;;  %v2871_v43 = vand.u32 2147483647, %v1061_v21  ;;  %v1384_v34 = vadd.f32 %v1383_v11, %v1310_v53  ;;  %v3461_v11 = vld [vmem:[#allocation21_spill] sm:$0xff] }
  0xc8   :  { %v829_v36 = vpop.permute.xlu1 %828  ;;  %v805_v60 = vpop.permute.xlu0 %804  ;;  %v972_v5 = vadd.f32 %v948_v33, %v754_v32  ;;  %v656_v29 = vsel %vm3455_vm3, %v610_v55, %v634_v59  ;;  %v707_v54 = vand.u32 2147483647, %v683_v22  ;;  %v3458_v26 = vand.u32 4294967292, %v2639_v63  ;;  %v3462_v59 = vld [vmem:[#allocation24_spill] sm:$0xff]  ;;  %v3466_v32 = vld [vmem:[#allocation26_spill] sm:$0xff]  ;;  %vm2930_vm11 = vmor %vm175_vm10, %vm187_vm14 }
  0xc9   :  { %v861_v41 = vsel %vm117_vm15, %v829_v36, %v805_v60  ;;  %v849_v10 = vsel %vm117_vm15, %v805_v60, %v829_v36  ;;  %v2884_v21 = vand.u32 2147483647, %v1062_v57  ;;  %v1311_v53 = vadd.f32 %v3461_v11, %v1141_v4  ;;  %vm3484_vm14 = vmmov %vm3457_vm0 }
  0xca   :  { %v877_v14 = vsub.f32 %v861_v41, %v3454_v13  ;;  %v878_v36 = vsub.f32 %v849_v10, %v3456_v2  ;;  %vm2880_vm4 = vcmp.eq.s32.totalorder %v3458_v26, %v304_v18  ;;  %v1312_v55 = vadd.f32 %v3462_v59, %v1142_v38 }
  0xcb   :  { %v708_v44 = vand.u32 2147483647, %v684_v8  ;;  %v2890_v33 = vsub.s32 %v2848_v25, %v1599_v20  ;;  %v1143_v24 = vadd.f32 %v3463_v9, %v971_v28  ;;  %v949_v22 = vmul.f32 %v900_v62, %v2751_v49  ;;  %v3471_v9 = vld [vmem:[#allocation28_spill] sm:$0xff]  ;;  %vm328_vm12 = vmand %vm2930_vm11, %vm2880_vm4 }
  0xcc   :  { %v901_v58 = vand.u32 2147483647, %v877_v14  ;;  %v636_v35 = vpop.permute.xlu1 %635  ;;  %v612_v42 = vpop.permute.xlu0 %611  ;;  %v685_v18 = vsub.f32 %v656_v29, %v3456_v2  ;;  %v3464_v41 = vrot.slane %v1599_v20, 4  ;;  %v1385_v4 = vadd.f32 %v1384_v34, %v1311_v53  ;;  %vm3492_vm4 = vmmov %vm3467_vm2 }
  0xcd   :  { %v669_v60 = vsel %vm3457_vm0, %v636_v35, %v612_v42  ;;  %v1144_v38 = vadd.f32 %v3466_v32, %v972_v5  ;;  %v755_v28 = vmul.f32 %v707_v54, %v2765_v45  ;;  %v902_v62 = vand.u32 2147483647, %v878_v36  ;;  %v3470_v54 = vld [vmem:[#allocation25_spill] sm:$0xff] }
  0xce   :  { %v2899_v57 = vsel %vm3465_vm1, %v211_v6, %v3464_v41  ;;  %v950_v13 = vmul.f32 %v901_v58, %v2739_v31  ;;  %v686_v8 = vsub.f32 %v669_v60, %v1689_v16  ;;  %v1386_v26 = vadd.f32 %v1385_v4, %v1312_v55  ;;  %vm3493_vm1 = vmmov %vm3467_vm2 }
  0xcf   :  { %v756_v34 = vmul.f32 %v708_v44, %v2759_v46  ;;  %v657_v5 = vsel %vm3467_vm2, %v612_v42, %v636_v35  ;;  %v3468_v58 = vrot.slane %v2447_v61, 4  ;;  %v1313_v36 = vadd.f32 %v3470_v54, %v1143_v24 }
  0xd0   :  { %v831_v10 = vpop.permute.xlu1 %830  ;;  %v807_v14 = vpop.permute.xlu0 %806  ;;  %v973_v11 = vadd.f32 %v949_v22, %v755_v28  ;;  %v709_v53 = vand.u32 2147483647, %v685_v18  ;;  %v1314_v41 = vadd.f32 %v3471_v9, %v1144_v38  ;;  %v710_v4 = vand.u32 2147483647, %v686_v8  ;;  %v3478_v9 = vld [vmem:[#allocation16_spill] sm:$0xff] }
  0xd1   :  { %v850_v29 = vsel %vm117_vm15, %v807_v14, %v831_v10  ;;  %v862_v2 = vsel %vm117_vm15, %v831_v10, %v807_v14  ;;  %v2916_v60 = vsel %vm3469_vm5, %v3468_v58, %v211_v6  ;;  %v974_v55 = vadd.f32 %v950_v13, %v756_v34  ;;  %v3475_v13 = vld [vmem:[#allocation27_spill] sm:$0xff] }
  0xd2   :  { %v879_v59 = vsub.f32 %v862_v2, %v1689_v16  ;;  %v880_v44 = vsub.f32 %v850_v29, %v1687_v12  ;;  %v951_v61 = vmul.f32 %v902_v62, %v2751_v49  ;;  %v687_v42 = vsub.f32 %v657_v5, %v1687_v12 }
  0xd3   :  { %v1387_v22 = vadd.f32 %v1386_v26, %v1313_v36  ;;  %v2937_v38 = vsub.s32 %v2916_v60, %v2639_v63  ;;  %v2941_v12 = vsub.s32 %v2899_v57, %v1599_v20  ;;  %v1145_v8 = vadd.f32 %v3475_v13, %v973_v11 }
  0xd4   :  { %v638_v32 = vpop.permute.xlu1 %637  ;;  %v614_v35 = vpop.permute.xlu0 %613  ;;  %v903_v6 = vand.u32 2147483647, %v879_v59  ;;  %v757_v10 = vmul.f32 %v709_v53, %v2765_v45  ;;  %v305_v14 = vand.u32 4294967292, %v2848_v25  ;;  %v1146_v62 = vadd.f32 %v2323_v3, %v974_v55  ;;  %v3477_v59 = vld [vmem:[#allocation29_spill] sm:$0xff] }
  0xd5   :  { %v670_v24 = vsel %vm3472_vm6, %v638_v32, %v614_v35  ;;  %v1388_v28 = vadd.f32 %v1387_v22, %v1314_v41  ;;  %v758_v29 = vmul.f32 %v710_v4, %v2759_v46  ;;  %v904_v2 = vand.u32 2147483647, %v880_v44  ;;  %v3479_v44 = vld [vmem:[#allocation31_spill] sm:$0xff] }
  0xd6   :  { %v688_v18 = vsub.f32 %v670_v24, %v1704_v39  ;;  %v952_v52 = vmul.f32 %v903_v6, %v2739_v31  ;;  %v975_v5 = vadd.f32 %v951_v61, %v757_v10  ;;  %v711_v58 = vand.u32 2147483647, %v687_v42  ;;  %v3482_v10 = vld [vmem:[#allocation33_spill] sm:$0xff] }
  0xd7   :  { %v658_v3 = vsel %vm3476_vm13, %v614_v35, %v638_v32  ;;  %v1315_v19 = vadd.f32 %v3477_v59, %v1145_v8  ;;  %v441_v55 = vsel %vm328_vm12, 5.4253473e-05, %v3297_v27  ;;  %v340_v4 = vand.u32 4294967280, %v2639_v63  ;;  %v3480_v35 = vld [vmem:[#allocation30_spill] sm:$0xff] }
  0xd8   :  { %v833_v26 = vpop.permute.xlu1 %832  ;;  %v809_v34 = vpop.permute.xlu0 %808  ;;  %v976_v36 = vadd.f32 %v952_v52, %v758_v29  ;;  %v712_v11 = vand.u32 2147483647, %v688_v18  ;;  %v1316_v61 = vadd.f32 %v3479_v44, %v1146_v62  ;;  %v953_v42 = vmul.f32 %v904_v2, %v2751_v49 }
  0xd9   :  { %v851_v54 = vsel %vm117_vm15, %v809_v34, %v833_v26  ;;  %v863_v25 = vsel %vm117_vm15, %v833_v26, %v809_v34  ;;  %vm176_vm7 = vcmp.eq.s32.totalorder %v2890_v33, 1  ;;  %vm188_vm8 = vcmp.eq.s32.totalorder %v2890_v33, 4294967295  ;;  %v3483_v26 = vld [vmem:[#allocation19_spill] sm:$0xff] }
  0xda   :  { %v881_v53 = vsub.f32 %v863_v25, %v1704_v39  ;;  %v882_v41 = vsub.f32 %v851_v54, %v3478_v9  ;;  %v341_v39 = vand.u32 4294967280, %v1599_v20  ;;  %v1389_v32 = vadd.f32 %v1388_v28, %v1315_v19  ;;  %v3485_v19 = vld [vmem:[#allocation32_spill] sm:$0xff]  ;;  %vm3020_vm2 = vmor %vm176_vm7, %vm188_vm8 }
  0xdb   :  { %v1147_v22 = vadd.f32 %v3480_v35, %v975_v5  ;;  %v689_v18 = vsub.f32 %v658_v3, %v3478_v9  ;;  %v759_v8 = vmul.f32 %v711_v58, %v2765_v45  ;;  %v1148_v52 = vadd.f32 %v3482_v10, %v976_v36  ;;  %v3486_v9 = vld [vmem:[#allocation35_spill] sm:$0xff]  ;;  %v3491_v35 = vld [vmem:[#allocation37_spill] sm:$0xff]  ;;  %vm3509_vm8 = vmmov %vm3493_vm1 }
  0xdc   :  { %v905_v6 = vand.u32 2147483647, %v881_v53  ;;  %v640_v24 = vpop.permute.xlu1 %639  ;;  %v616_v16 = vpop.permute.xlu0 %615  ;;  %v760_v62 = vmul.f32 %v712_v11, %v2759_v46  ;;  %v906_v2 = vand.u32 2147483647, %v882_v41  ;;  %v2979_v28 = vmul.f32 %v2871_v43, %v441_v55 }
  0xdd   :  { %v671_v13 = vsel %vm3481_vm9, %v640_v24, %v616_v16  ;;  %v2982_v5 = vmul.f32 %v2884_v21, %v441_v55  ;;  %v1390_v54 = vadd.f32 %v1389_v32, %v1316_v61  ;;  %v977_v25 = vadd.f32 %v953_v42, %v759_v8  ;;  %vm3510_vm9 = vmmov %vm3493_vm1 }
  0xde   :  { %v954_v29 = vmul.f32 %v905_v6, %v2739_v31  ;;  %v690_v34 = vsub.f32 %v671_v13, %v3483_v26  ;;  %vm248_vm10 = vcmp.eq.s32.totalorder %v2937_v38, 4  ;;  %v713_v36 = vand.u32 2147483647, %v689_v18  ;;  %v3489_v6 = vld [vmem:[#allocation18_spill] sm:$0xff] }
  0xdf   :  { %v659_v11 = vsel %vm3484_vm14, %v616_v16, %v640_v24  ;;  %v1317_v21 = vadd.f32 %v3485_v19, %v1147_v22  ;;  %v1318_v41 = vadd.f32 %v3486_v9, %v1148_v52  ;;  %vm260_vm3 = vcmp.eq.s32.totalorder %v2937_v38, 4294967292  ;;  %v3490_v16 = vld [vmem:[#allocation34_spill] sm:$0xff]  ;;  %v3501_v38 = vld [vmem:[#allocation17_spill] sm:$0xff] }
  0xe0   :  { %v978_v3 = vadd.f32 %v954_v29, %v760_v62  ;;  %v835_v53 = vpop.permute.xlu1 %834  ;;  %v811_v58 = vpop.permute.xlu0 %810  ;;  %vm2996_vm0 = vcmp.eq.s32.totalorder %v293_v40, %v305_v14  ;;  %v955_v44 = vmul.f32 %v906_v2, %v2751_v49  ;;  %v714_v61 = vand.u32 2147483647, %v690_v34  ;;  %vm3041_vm6 = vmor %vm248_vm10, %vm260_vm3 }
  0xe1   :  { %v852_v59 = vsel %vm117_vm15, %v811_v58, %v835_v53  ;;  %v864_v43 = vsel %vm117_vm15, %v835_v53, %v811_v58  ;;  %v1149_v32 = vadd.f32 %v3490_v16, %v977_v25  ;;  %v691_v18 = vsub.f32 %v659_v11, %v3489_v6  ;;  %v3496_v58 = vld [vmem:[#allocation36_spill] sm:$0xff]  ;;  %vm329_vm11 = vmand %vm3020_vm2, %vm2996_vm0 }
  0xe2   :  { %v883_v42 = vsub.f32 %v864_v43, %v3483_v26  ;;  %v884_v24 = vsub.f32 %v852_v59, %v3489_v6  ;;  %v1150_v22 = vadd.f32 %v3491_v35, %v978_v3  ;;  %v352_v40 = vand.u32 4294967280, %v2916_v60  ;;  %vm3517_vm0 = vmmov %vm3493_vm1 }
  0xe3   :  { %v1391_v14 = vadd.f32 %v1390_v54, %v1317_v21  ;;  %v761_v10 = vmul.f32 %v713_v36, %v2765_v45  ;;  %v353_v34 = vand.u32 4294967280, %v2899_v57  ;;  %v762_v53 = vmul.f32 %v714_v61, %v2759_v46 }
  0xe4   :  { %v642_v13 = vpop.permute.xlu1 %641  ;;  %v618_v8 = vpop.permute.xlu0 %617  ;;  %v907_v52 = vand.u32 2147483647, %v883_v42  ;;  %v908_v29 = vand.u32 2147483647, %v884_v24  ;;  %v1319_v36 = vadd.f32 %v3496_v58, %v1149_v32  ;;  %v1320_v11 = vadd.f32 %v2530_v48, %v1150_v22  ;;  %v3505_v22 = vld [vmem:[#allocation15_spill] sm:$0xff]  ;;  %v3511_v58 = vld [vmem:[#allocation38_spill] sm:$0xff] }
  0xe5   :  { %v672_v62 = vsel %vm3492_vm4, %v642_v13, %v618_v8  ;;  %v660_v2 = vsel %vm3493_vm1, %v618_v8, %v642_v13  ;;  %v1392_v25 = vadd.f32 %v1391_v14, %v1318_v41  ;;  %v979_v3 = vadd.f32 %v955_v44, %v761_v10  ;;  %vm3518_vm4 = vmmov %vm3517_vm0 }
  0xe6   :  { %v692_v26 = vsub.f32 %v672_v62, %v1772_v37  ;;  %v956_v60 = vmul.f32 %v907_v52, %v2739_v31  ;;  %v715_v59 = vand.u32 2147483647, %v691_v18  ;;  %vm3028_vm5 = vcmp.eq.s32.totalorder %v340_v4, %v352_v40 }
  0xe7   :  { %v693_v33 = vsub.f32 %v660_v2, %v1720_v51  ;;  %v957_v63 = vmul.f32 %v908_v29, %v2751_v49  ;;  %v1393_v6 = vadd.f32 %v1392_v25, %v1319_v36  ;;  %v1151_v24 = vadd.f32 %v2520_v7, %v979_v3  ;;  %vm376_vm7 = vmand %vm3041_vm6, %vm3028_vm5 }
  0xe8   :  { %v837_v43 = vpop.permute.xlu1 %836  ;;  %v813_v19 = vpop.permute.xlu0 %812  ;;  %v980_v9 = vadd.f32 %v956_v60, %v762_v53  ;;  %v716_v4 = vand.u32 2147483647, %v692_v26  ;;  %v3502_v16 = vrot.slane %v3501_v38, 7  ;;  %v3503_v32 = vrot.slane %v1848_v17, 7 }
  0xe9   :  { %v853_v41 = vsel %vm117_vm15, %v813_v19, %v837_v43  ;;  %v865_v44 = vsel %vm117_vm15, %v837_v43, %v813_v19  ;;  %vm3504_vm12 = vcmp.lt.s32.totalorder %v1592_v15, 1  ;;  %v3506_v18 = vrot.slane %v3505_v22, 7 }
  0xea   :  { %v885_v61 = vsub.f32 %v865_v44, %v1772_v37  ;;  %v886_v42 = vsub.f32 %v853_v41, %v1720_v51  ;;  %v1017_v35 = vsel %vm3504_vm12, %v3503_v32, %v3502_v16  ;;  %v3507_v37 = vrot.slane %v1814_v47, 7  ;;  %vm3508_vm13 = vmmov %vm3504_vm12 }
  0xeb   :  { %v763_v55 = vmul.f32 %v715_v59, %v2765_v45  ;;  %v1152_v13 = vadd.f32 %v2547_v50, %v980_v9  ;;  %v1394_v10 = vadd.f32 %v1393_v6, %v1320_v11  ;;  %v3076_v62 = vsel %vm329_vm11, 5.4253473e-05, %v3297_v27  ;;  %v3512_v11 = vld [vmem:[#allocation40_spill] sm:$0xff]  ;;  %vm3531_vm11 = vmmov %vm3517_vm0 }
  0xec   :  { %v3065_v51 = vsel %vm3508_vm13, %v3507_v37, %v3506_v18  ;;  %v909_v7 = vand.u32 2147483647, %v885_v61  ;;  %v910_v8 = vand.u32 2147483647, %v886_v42  ;;  %v644_v40 = vpop.permute.xlu1 %643  ;;  %v620_v14 = vpop.permute.xlu0 %619  ;;  %v1182_v29 = vrot.slane %v1848_v17, 4  ;;  %vm3532_vm12 = vmmov %vm3517_vm0 }
  0xed   :  { %v673_v52 = vsel %vm3509_vm8, %v644_v40, %v620_v14  ;;  %v981_v2 = vadd.f32 %v957_v63, %v763_v55  ;;  %v717_v50 = vand.u32 2147483647, %v693_v33  ;;  %v764_v26 = vmul.f32 %v716_v4, %v2759_v46  ;;  %v3513_v4 = vld [vmem:[#allocation39_spill] sm:$0xff] }
  0xee   :  { %v958_v25 = vmul.f32 %v909_v7, %v2739_v31  ;;  %v661_v3 = vsel %vm3510_vm9, %v620_v14, %v644_v40  ;;  %v694_v53 = vsub.f32 %v673_v52, %v1800_v0  ;;  %v3085_v60 = vsel %vm376_vm7, 5.4253473e-05, %v3297_v27 }
  0xef   :  { %v1063_v54 = vsub.f32 %v1017_v35, %v3501_v38  ;;  %v1321_v36 = vadd.f32 %v3511_v58, %v1151_v24  ;;  %v1322_v59 = vadd.f32 %v3512_v11, %v1152_v13  ;;  %v959_v43 = vmul.f32 %v910_v8, %v2751_v49  ;;  %v3514_v24 = vld [vmem:[#allocation42_spill] sm:$0xff] }
  0xf0   :  { %v982_v19 = vadd.f32 %v958_v25, %v764_v26  ;;  %v839_v21 = vpop.permute.xlu1 %838  ;;  %v815_v9 = vpop.permute.xlu0 %814  ;;  %v1064_v44 = vsub.f32 %v3065_v51, %v3505_v22  ;;  %v1183_v48 = vrot.slane %v1814_v47, 4  ;;  %v1153_v61 = vadd.f32 %v3513_v4, %v981_v2  ;;  %v3519_v26 = vld [vmem:[#allocation41_spill] sm:$0xff] }
  0xf1   :  { %v854_v33 = vsel %vm117_vm15, %v815_v9, %v839_v21  ;;  %v866_v41 = vsel %vm117_vm15, %v839_v21, %v815_v9  ;;  %v1395_v63 = vadd.f32 %v1394_v10, %v1321_v36  ;;  %v765_v42 = vmul.f32 %v717_v50, %v2765_v45  ;;  %v3524_v36 = vld [vmem:[#allocation44_spill] sm:$0xff] }
  0xf2   :  { %v695_v6 = vsub.f32 %v661_v3, %v1774_v30  ;;  %v1154_v16 = vadd.f32 %v3514_v24, %v982_v19  ;;  %v718_v32 = vand.u32 2147483647, %v694_v53  ;;  %v887_v35 = vsub.f32 %v866_v41, %v1800_v0 }
  0xf3   :  { %v888_v18 = vsub.f32 %v854_v33, %v1774_v30  ;;  %vm249_vm10 = vcmp.eq.s32.totalorder %v2941_v12, 4  ;;  %vm261_vm14 = vcmp.eq.s32.totalorder %v2941_v12, 4294967292  ;;  %v1396_v37 = vadd.f32 %v1395_v63, %v1322_v59  ;;  %v3527_v33 = vld [vmem:[#allocation43_spill] sm:$0xff] }
  0xf4   :  { %v983_v55 = vadd.f32 %v959_v43, %v765_v42  ;;  %v646_v13 = vpop.permute.xlu1 %645  ;;  %v622_v7 = vpop.permute.xlu0 %621  ;;  %v3106_v8 = vand.u32 2147483647, %v1063_v54  ;;  %v3515_v40 = vrot.slane %v1800_v0, 4  ;;  %vm3516_vm3 = vcmp.lt.s32.totalorder %v1592_v15, 4  ;;  %vm3169_vm13 = vmor %vm249_vm10, %vm261_vm14 }
  0xf5   :  { %v911_v10 = vand.u32 2147483647, %v887_v35  ;;  %v912_v52 = vand.u32 2147483647, %v888_v18  ;;  %v662_v2 = vsel %vm3517_vm0, %v622_v7, %v646_v13  ;;  %v674_v50 = vsel %vm3518_vm4, %v646_v13, %v622_v7  ;;  %vm3523_vm2 = vmmov %vm3516_vm3 }
  0xf6   :  { %v1189_v14 = vsel %vm3516_vm3, %v3515_v40, %v1182_v29  ;;  %v1323_v25 = vadd.f32 %v3519_v26, %v1153_v61  ;;  %v719_v3 = vand.u32 2147483647, %v695_v6  ;;  %v696_v53 = vsub.f32 %v674_v50, %v1848_v17  ;;  %vm3526_vm5 = vmmov %vm3523_vm2  ;;  %v3533_v26 = vld [vmem:[#allocation47_spill] sm:$0xff] }
  0xf7   :  { %vm3122_vm1 = vcmp.eq.s32.totalorder %v341_v39, %v353_v34  ;;  %v3522_v54 = vrot.slane %v3501_v38, 4  ;;  %v1324_v11 = vadd.f32 %v3524_v36, %v1154_v16  ;;  %v766_v59 = vmul.f32 %v718_v32, %v2759_v46  ;;  %vm3529_vm6 = vmmov %vm3523_vm2 }
  0xf8   :  { %v960_v43 = vmul.f32 %v911_v10, %v2739_v31  ;;  %v3525_v57 = vrot.slane %v1774_v30, 4  ;;  %v1397_v39 = vadd.f32 %v1396_v37, %v1323_v25  ;;  %v961_v34 = vmul.f32 %v912_v52, %v2751_v49  ;;  %v841_v21 = vpop.permute.xlu1 %840  ;;  %v817_v9 = vpop.permute.xlu0 %816  ;;  %v3530_v52 = vld [vmem:[#allocation45_spill] sm:$0xff]  ;;  %vm377_vm7 = vmand %vm3169_vm13, %vm3122_vm1 }
  0xf9   :  { %v3130_v58 = vsel %vm3523_vm2, %v1182_v29, %v3522_v54  ;;  %v697_v19 = vsub.f32 %v662_v2, %v1814_v47  ;;  %v1231_v29 = vsub.f32 %v1189_v14, %v1848_v17  ;;  %v1155_v41 = vadd.f32 %v3527_v33, %v983_v55 }
  0xfa   :  { %v1190_v20 = vsel %vm3526_vm5, %v3525_v57, %v1183_v48  ;;  %v984_v63 = vadd.f32 %v960_v43, %v766_v59  ;;  %v855_v4 = vsel %vm117_vm15, %v817_v9, %v841_v21  ;;  %v867_v30 = vsel %vm117_vm15, %v841_v21, %v817_v9  ;;  %v3536_v43 = vld [vmem:[#allocation46_spill] sm:$0xff] }
  0xfb   :  { %v767_v61 = vmul.f32 %v719_v3, %v2765_v45  ;;  %v720_v42 = vand.u32 2147483647, %v696_v53  ;;  %v889_v6 = vsub.f32 %v867_v30, %v1848_v17  ;;  %v890_v24 = vsub.f32 %v855_v4, %v1814_v47 }
  0xfc   :  { %v1398_v16 = vadd.f32 %v1397_v39, %v1324_v11  ;;  %v1156_v32 = vadd.f32 %v2733_v56, %v984_v63  ;;  %v3528_v35 = vrot.slane %v3505_v22, 4  ;;  %v1232_v37 = vsub.f32 %v1190_v20, %v1814_v47  ;;  %v648_v14 = vpop.permute.xlu1 %647  ;;  %v624_v10 = vpop.permute.xlu0 %623 }
  0xfd   :  { %v985_v55 = vadd.f32 %v961_v34, %v767_v61  ;;  %v721_v13 = vand.u32 2147483647, %v697_v19  ;;  %v913_v7 = vand.u32 2147483647, %v889_v6  ;;  %v914_v40 = vand.u32 2147483647, %v890_v24 }
  0xfe   :  { %v1188_v18 = vsel %vm3529_vm6, %v1183_v48, %v3528_v35  ;;  %v1325_v17 = vadd.f32 %v3530_v52, %v1155_v41  ;;  %v663_v2 = vsel %vm3531_vm11, %v624_v10, %v648_v14  ;;  %v675_v56 = vsel %vm3532_vm12, %v648_v14, %v624_v10 }
  0xff   :  { %v1255_v50 = vand.u32 2147483647, %v1231_v29  ;;  %v1326_v15 = vadd.f32 %v3533_v26, %v1156_v32  ;;  %v768_v48 = vmul.f32 %v720_v42, %v2759_v46  ;;  %v962_v47 = vmul.f32 %v913_v7, %v2739_v31 }
 0x100   :  { %v963_v25 = vmul.f32 %v914_v40, %v2751_v49  ;;  %v698_v53 = vsub.f32 %v675_v56, %v3501_v38  ;;  %v699_v54 = vsub.f32 %v663_v2, %v3505_v22  ;;  %v1088_v36 = vand.u32 2147483647, %v1064_v44  ;;  %v843_v39 = vpop.permute.xlu1 %842  ;;  %v819_v34 = vpop.permute.xlu0 %818 }
 0x101   :  { %v1233_v11 = vsub.f32 %v3130_v58, %v3501_v38  ;;  %v1399_v59 = vadd.f32 %v1398_v16, %v1325_v17  ;;  %v1157_v57 = vadd.f32 %v3536_v43, %v985_v55  ;;  %v769_v12 = vmul.f32 %v721_v13, %v2765_v45 }
 0x102   :  { %v986_v20 = vadd.f32 %v962_v47, %v768_v48  ;;  %v856_v19 = vsel %vm117_vm15, %v819_v34, %v843_v39  ;;  %v868_v21 = vsel %vm117_vm15, %v843_v39, %v819_v34  ;;  %v1234_v51 = vsub.f32 %v1188_v18, %v3505_v22 }
 0x103   :  { %v1304_v44 = vmul.f32 %v1255_v50, %v3085_v60  ;;  %v987_v58 = vadd.f32 %v963_v25, %v769_v12  ;;  %v1256_v29 = vand.u32 2147483647, %v1232_v37  ;;  %v1400_v33 = vadd.f32 %v1399_v59, %v1326_v15 }
 0x104   :  { %v1158_v9 = vadd.f32 %v2979_v28, %v986_v20  ;;  %v722_v41 = vand.u32 2147483647, %v698_v53  ;;  %v723_v63 = vand.u32 2147483647, %v699_v54  ;;  %v891_v4 = vsub.f32 %v868_v21, %v3501_v38 }
 0x105   :  { %v892_v1 = vsub.f32 %v856_v19, %v3505_v22  ;;  %v1327_v0 = vadd.f32 %v2838_v23, %v1157_v57  ;;  %v479_v30 = vsel %vm377_vm7, 5.4253473e-05, %v3297_v27  ;;  %v1136_v61 = vmul.f32 %v3106_v8, %v3076_v62 }
 0x106   :  { %v1137_v42 = vmul.f32 %v1088_v36, %v3076_v62  ;;  %v915_v6 = vand.u32 2147483647, %v891_v4  ;;  %v1257_v28 = vand.u32 2147483647, %v1233_v11  ;;  %v1328_v16 = vadd.f32 %v1304_v44, %v1158_v9 }
 0x107   :  { %v916_v24 = vand.u32 2147483647, %v892_v1  ;;  %v1159_v32 = vadd.f32 %v2982_v5, %v987_v58  ;;  %v1258_v35 = vand.u32 2147483647, %v1234_v51  ;;  %v1305_v38 = vmul.f32 %v1256_v29, %v3085_v60 }
 0x108   :  { %v1401_v18 = vadd.f32 %v1400_v33, %v1327_v0  ;;  %v770_v22 = vmul.f32 %v722_v41, %v2759_v46  ;;  %v771_v23 = vmul.f32 %v723_v63, %v2765_v45  ;;  %v964_v27 = vmul.f32 %v915_v6, %v2739_v31 }
 0x109   :  { %v965_v8 = vmul.f32 %v916_v24, %v2751_v49  ;;  %v1306_v55 = vmul.f32 %v1257_v28, %v479_v30  ;;  %v1307_v14 = vmul.f32 %v1258_v35, %v479_v30  ;;  %v1329_v5 = vadd.f32 %v1305_v38, %v1159_v32 }
 0x10a   :  { %v988_v37 = vadd.f32 %v964_v27, %v770_v22  ;;  %v1402_v13 = vadd.f32 %v1401_v18, %v1328_v16 }
 0x10b   :  { %v989_v62 = vadd.f32 %v965_v8, %v771_v23 }
 0x10c   :  { %v1160_v7 = vadd.f32 %v1136_v61, %v988_v37  ;;  %v1403_v52 = vadd.f32 %v1402_v13, %v1329_v5 }
 0x10d   :  { %v1161_v40 = vadd.f32 %v1137_v42, %v989_v62 }
 0x10e   :  { %v1330_v10 = vadd.f32 %v1306_v55, %v1160_v7 }
 0x10f   :  { %v1331_v60 = vadd.f32 %v1307_v14, %v1161_v40 }
 0x110   :  { %v1404_v17 = vadd.f32 %v1403_v52, %v1330_v10 }
 0x112   :  { %v1405_v2 = vadd.f32 %v1404_v17, %v1331_v60 }
 0x114   :  { %1406 = vadd.xlane.f32.xlu0 %v1405_v2 }
 0x1a1   :  { %v1407_v46 = vpop.xlane.xlu0 %1406 }
 0x1a2   :  { %v1408_v45 = vrot.slane %v1407_v46, 4 }
 0x1a4   :  { %v1409_v56 = vadd.f32 %v1408_v45, %v1407_v46 }
 0x1a6   :  { %v1410_v31 = vrot.slane %v1409_v56, 2 }
 0x1a8   :  { %v1411_v50 = vadd.f32 %v1410_v31, %v1409_v56 }
 0x1aa   :  { %v1412_v49 = vrot.slane %v1411_v50, 1 }
 0x1ac   :  { %v1413_v26 = vadd.f32 %v1412_v49, %v1411_v50 }
 0x1ae   :  { %1434 = vpush %v1413_v26 }
 0x1df   :  { %s1435_s8 = spop %1434 }
 0x1e0   :  { %v1415_v15 = vstv %s1435_s8 }
 0x1e1   :  { %1417 = vst [vmem:[#allocation9] sm:$0xff] %v1415_v15 }
 0x1e2   :  { %1498 = shalt.err (!%p1495_p6)
}
 0x1e3   :  { %s1499_s12 = scalar_lea.hbm %s3220_s2, 128 }
 0x1e4   :  { %p1500_p7 = scmp.ne.s32.totalorder %s3220_s2, %s1499_s12  ;;  %p1503_p8 = scmp.lt.u32.totalorder %s1499_s12, %s3220_s2 }
 0x1e6   :  { %p1505_p9 = pnand %p1503_p8, %p1500_p7 }
 0x1e8   :  { %1508 = shalt.err (!%p1505_p9)
}
 0x1e9   :  { %1427 = dma.vmem_to_hbm [thread:$0]  %s1425_s7, 128, %s3220_s2, [#allocation6]  }
 0x1ea   :  { %1513 = dma.done.wait [#allocation6], 128  }
 0x1eb   :  { %1514 = vsyncadd [#allocation6], 4294967168 }
 0x1ec   :  { %1431 = vsyncpa [#allocation5], 1 }
 0x1ed   :  { %1432 = vsyncpa [#allocation8], 1 }
 0x1ee   :  { %1433 = vsyncpa [#allocation6], 1 }

</bundles_post_ra>
